<compile_context>
chip_gen: v6e
topology: v6e:2x2x1
jax: 0.10.0
libtpu: 0.0.40
codegen_flags: <defaults>
</compile_context>

<pallas_src>
import functools

import jax
import jax.numpy as jnp
from jax.experimental import pallas as pl
from jax.experimental.pallas import tpu as pltpu


def _layernorm_kernel(x_ref, gamma_ref, beta_ref, o_ref, *, eps, inv_c):
    # x_ref: (TR, C) block in VMEM; gamma/beta: (1, C), resident across steps.
    x = x_ref[...].astype(jnp.float32)
    mean = jnp.sum(x, axis=-1, keepdims=True) * inv_c          # XLU reduce + VPU mul
    xc = x - mean
    var = jnp.sum(xc * xc, axis=-1, keepdims=True) * inv_c     # two-pass: stable
    inv = jax.lax.rsqrt(var + eps)                             # EUP
    y = xc * inv
    y = y * gamma_ref[...].astype(jnp.float32) + beta_ref[...].astype(jnp.float32)
    o_ref[...] = y.astype(o_ref.dtype)


def layernorm_lastdim(x, gamma, beta, *, eps=1e-5, block_rows=512):
    """LayerNorm over the last axis. x: (..., C); gamma, beta: (C,)."""
    orig_shape = x.shape
    C = orig_shape[-1]
    rows = 1
    for d in orig_shape[:-1]:
        rows *= d

    x2 = x.reshape(rows, C)
    g2 = gamma.reshape(1, C)
    b2 = beta.reshape(1, C)

    # Row tile: multiple of 8 (sublane), large enough to amortize per-step
    # overhead, small enough to stay well under the v7x scoped-VMEM budget
    # (512 x 1536 x 4B = 3 MiB per buffer; ~12 MiB with in+out double-buffer).
    rows_pad8 = ((rows + 7) // 8) * 8
    tr = min(block_rows, rows_pad8)
    rows_padded = ((rows + tr - 1) // tr) * tr
    if rows_padded != rows:
        # Zero-padded rows normalize to finite values (rsqrt(eps)); discarded below.
        x2 = jnp.pad(x2, ((0, rows_padded - rows), (0, 0)))

    grid = (rows_padded // tr,)

    kernel = functools.partial(_layernorm_kernel, eps=eps, inv_c=1.0 / C)

    out = pl.pallas_call(
        kernel,
        out_shape=jax.ShapeDtypeStruct((rows_padded, C), x.dtype),
        grid_spec=pl.GridSpec(
            grid=grid,
            in_specs=[
                pl.BlockSpec((tr, C), lambda i: (i, 0)),   # row tiles, pipelined
                pl.BlockSpec((1, C), lambda i: (0, 0)),    # gamma, resident
                pl.BlockSpec((1, C), lambda i: (0, 0)),    # beta, resident
            ],
            out_specs=pl.BlockSpec((tr, C), lambda i: (i, 0)),
        ),
        compiler_params=pltpu.CompilerParams(
            dimension_semantics=("parallel",),  # rows independent -> split across TCs
        ),
    )(x2, g2, b2)

    if rows_padded != rows:
        out = out[:rows]
    return out.reshape(orig_shape)


if __name__ == "__main__":
    key = jax.random.PRNGKey(0)
    kx, kg, kb = jax.random.split(key, 3)

    # Shape consistent with the module's forward: x255 is (1, 7, 7, 1536).
    B, H, W, C = 1, 7, 7, 1536
    x = jax.random.normal(kx, (B, H, W, C), dtype=jnp.float32)
    # Random deterministic affine params so the elementwise_affine path is exercised
    # (PyTorch default init would be ones/zeros).
    gamma = 1.0 + 0.1 * jax.random.normal(kg, (C,), dtype=jnp.float32)
    beta = 0.1 * jax.random.normal(kb, (C,), dtype=jnp.float32)

    y = layernorm_lastdim(x, gamma, beta)
    y = jax.block_until_ready(y)

    # Reference in plain JAX (same semantics as torch.nn.LayerNorm).
    xf = x.astype(jnp.float32)
    mean = jnp.mean(xf, axis=-1, keepdims=True)
    var = jnp.mean((xf - mean) ** 2, axis=-1, keepdims=True)
    ref = (xf - mean) / jnp.sqrt(var + 1e-5) * gamma + beta
    assert y.shape == x.shape and y.dtype == x.dtype
    assert jnp.allclose(y, ref, atol=1e-5, rtol=1e-5), "mismatch vs reference"

    print("KERNEL_OK")
</pallas_src>

<mosaic_0001>
module attributes {stable_mosaic.version = 11 : i64} {
  func.func @_layernorm_kernel(%arg0: i32, %arg1: memref<56x1536xf32, #tpu.memory_space<vmem>>, %arg2: memref<1x1536xf32, #tpu.memory_space<vmem>>, %arg3: memref<1x1536xf32, #tpu.memory_space<vmem>>, %arg4: memref<56x1536xf32, #tpu.memory_space<vmem>>) attributes {dimension_semantics = [#tpu.dimension_semantics<parallel>], iteration_bounds = array<i64: 1>, scalar_prefetch = 0 : i64, scratch_operands = 0 : i64, tpu.core_type = #tpu.core_type<tc>, window_params = [{transform_indices = @transform_0, window_bounds = array<i64: 56, 1536>}, {pipeline_mode = #tpu.pipeline_mode<synchronous>, transform_indices = @transform_1, window_bounds = array<i64: 1, 1536>}, {pipeline_mode = #tpu.pipeline_mode<synchronous>, transform_indices = @transform_2, window_bounds = array<i64: 1, 1536>}, {transform_indices = @transform_3, window_bounds = array<i64: 56, 1536>}]} {
    %c0 = arith.constant 0 : index
    %c0_0 = arith.constant 0 : index
    %0 = vector.load %arg1[%c0, %c0_0] : memref<56x1536xf32, #tpu.memory_space<vmem>>, vector<56x1536xf32>
    %cst = arith.constant dense<0.000000e+00> : vector<56xf32>
    %1 = vector.multi_reduction <add>, %0, %cst [1] : vector<56x1536xf32> to vector<56xf32>
    %2 = vector.shape_cast %1 : vector<56xf32> to vector<56x1xf32>
    %cst_1 = arith.constant 6.51041686E-4 : f32
    %3 = vector.broadcast %cst_1 : f32 to vector<56x1xf32>
    %4 = arith.mulf %2, %3 : vector<56x1xf32>
    %5 = vector.broadcast %4 : vector<56x1xf32> to vector<56x1536xf32>
    %6 = arith.subf %0, %5 : vector<56x1536xf32>
    %7 = arith.mulf %6, %6 : vector<56x1536xf32>
    %cst_2 = arith.constant dense<0.000000e+00> : vector<56xf32>
    %8 = vector.multi_reduction <add>, %7, %cst_2 [1] : vector<56x1536xf32> to vector<56xf32>
    %9 = vector.shape_cast %8 : vector<56xf32> to vector<56x1xf32>
    %cst_3 = arith.constant 6.51041686E-4 : f32
    %10 = vector.broadcast %cst_3 : f32 to vector<56x1xf32>
    %11 = arith.mulf %9, %10 : vector<56x1xf32>
    %cst_4 = arith.constant 9.99999974E-6 : f32
    %12 = vector.broadcast %cst_4 : f32 to vector<56x1xf32>
    %13 = arith.addf %11, %12 : vector<56x1xf32>
    %14 = math.rsqrt %13 : vector<56x1xf32>
    %15 = vector.broadcast %14 : vector<56x1xf32> to vector<56x1536xf32>
    %16 = arith.mulf %6, %15 : vector<56x1536xf32>
    %c0_5 = arith.constant 0 : index
    %c0_6 = arith.constant 0 : index
    %17 = vector.load %arg2[%c0_5, %c0_6] : memref<1x1536xf32, #tpu.memory_space<vmem>>, vector<1x1536xf32>
    %18 = vector.broadcast %17 : vector<1x1536xf32> to vector<56x1536xf32>
    %19 = arith.mulf %16, %18 : vector<56x1536xf32>
    %c0_7 = arith.constant 0 : index
    %c0_8 = arith.constant 0 : index
    %20 = vector.load %arg3[%c0_7, %c0_8] : memref<1x1536xf32, #tpu.memory_space<vmem>>, vector<1x1536xf32>
    %21 = vector.broadcast %20 : vector<1x1536xf32> to vector<56x1536xf32>
    %22 = arith.addf %19, %21 : vector<56x1536xf32>
    %c0_9 = arith.constant 0 : index
    %c0_10 = arith.constant 0 : index
    %23 = vector.load %arg4[%c0_9, %c0_10] : memref<56x1536xf32, #tpu.memory_space<vmem>>, vector<56x1536xf32>
    tpu.vector_store %arg4[%c0_9, %c0_10], %22 {strides = array<i32>} : memref<56x1536xf32, #tpu.memory_space<vmem>>, vector<56x1536xf32>,
    return
  }
  func.func @transform_0(%arg0: i32) -> (i32, i32) {
    %c0_i32 = arith.constant 0 : i32
    %c0_i32_0 = arith.constant 0 : i32
    return %arg0, %c0_i32 : i32, i32
  }
  func.func @transform_1(%arg0: i32) -> (i32, i32) {
    %c0_i32 = arith.constant 0 : i32
    %c0_i32_0 = arith.constant 0 : i32
    %c0_i32_1 = arith.constant 0 : i32
    return %c0_i32, %c0_i32_0 : i32, i32
  }
  func.func @transform_2(%arg0: i32) -> (i32, i32) {
    %c0_i32 = arith.constant 0 : i32
    %c0_i32_0 = arith.constant 0 : i32
    %c0_i32_1 = arith.constant 0 : i32
    return %c0_i32, %c0_i32_0 : i32, i32
  }
  func.func @transform_3(%arg0: i32) -> (i32, i32) {
    %c0_i32 = arith.constant 0 : i32
    %c0_i32_0 = arith.constant 0 : i32
    return %arg0, %c0_i32 : i32, i32
  }
}

</mosaic_0001>

<bundles_post_ra>
// kernel: tpu_custom_call.1
= control target key start
LH: loop header
LB: loop body
LE: loop exit
PB: predicated region body
PF: predicated region fallthrough
CT: control target
= control target key end

     0   :  { %8 = vsyncpa [#allocation3], 0  ;;  %s2202_s0 = inlined_call_operand.hbm [shape: f32[56,1536], index: 0, kind: input, shape index: {}]   ;;  %s2203_s1 = inlined_call_operand.hbm [shape: f32[1,1536], index: 1, kind: input, shape index: {}]   ;;  %s2204_s2 = inlined_call_operand.hbm [shape: f32[1,1536], index: 2, kind: input, shape index: {}]   ;;  %s2205_s3 = inlined_call_operand.hbm [shape: f32[56,1536], index: 3, kind: output, shape index: {}]  }
   0x1   :  { %9 = vsyncpa [#allocation6], 0 }
   0x2   :  { %10 = vsyncpa [#allocation4], 0  ;;  %s1102_s12 = smov [#allocation5]   ;;  %s1103_s14 = smov [#allocation2]  }
   0x3   :  { %s29_s13 = sshll.u32 %s1102_s12, 4  ;;  %s16_s15 = sshll.u32 %s1103_s14, 4  ;;  %s30_s13 = int_to_ptr.vmem [resolvable:$true] %s29_s13  ;;  %s17_s15 = int_to_ptr.vmem [resolvable:$true] %s16_s15 }
   0x4   :  { %s1024_s16 = scalar_lea.vmem %s30_s13, 192  ;;  %p1029_p1 = scmp.lt.s32.totalorder %s30_s13, %s30_s13 }
   0x5   :  { %p1025_p0 = scmp.ne.s32.totalorder %s30_s13, %s1024_s16  ;;  %p1030_p2 = scmp.lt.s32.totalorder %s1024_s16, %s1024_s16 }
   0x7   :  { %p1031_p3 = por %p1030_p2, %p1029_p1 }
   0x9   :  { %p1032_p4 = pnand %p1031_p3, %p1025_p0 }
   0xb   :  { %1035 = shalt.err (!%p1032_p4)
}
   0xc   :  { %32 = dma.hbm_to_vmem [thread:$0]  %s2203_s1, 192, %s30_s13, [#allocation6]  }
   0xd   :  { %s1044_s19 = scalar_lea.vmem %s17_s15, 10752  ;;  %p1049_p6 = scmp.lt.s32.totalorder %s17_s15, %s17_s15 }
   0xe   :  { %p1045_p5 = scmp.ne.s32.totalorder %s17_s15, %s1044_s19  ;;  %p1050_p7 = scmp.lt.s32.totalorder %s1044_s19, %s1044_s19 }
  0x10   :  { %p1051_p8 = por %p1050_p7, %p1049_p6 }
  0x12   :  { %p1052_p9 = pnand %p1051_p8, %p1045_p5 }
  0x14   :  { %1055 = shalt.err (!%p1052_p9)
}
  0x15   :  { %s1104_s20 = smov 1536   ;;  %s1105_s21 = smov 96  }
  0x16   :  { %22 = dma.hbm_to_vmem [thread:$0]  %s2202_s0, 10752, %s17_s15, [#allocation3], %s1104_s20, %s1104_s20, %s1105_s21  }
  0x17   :  { %s1106_s24 = smov [#allocation7]  }
  0x18   :  { %s39_s25 = sshll.u32 %s1106_s24, 4  ;;  %s40_s25 = int_to_ptr.vmem [resolvable:$true] %s39_s25 }
  0x19   :  { %s1064_s1 = scalar_lea.vmem %s40_s25, 192  ;;  %p1069_p11 = scmp.lt.s32.totalorder %s40_s25, %s40_s25 }
  0x1a   :  { %p1065_p10 = scmp.ne.s32.totalorder %s40_s25, %s1064_s1  ;;  %p1070_p12 = scmp.lt.s32.totalorder %s1064_s1, %s1064_s1 }
  0x1c   :  { %p1071_p13 = por %p1070_p12, %p1069_p11 }
  0x1e   :  { %p1072_p0 = pnand %p1071_p13, %p1065_p10 }
  0x20   :  { %1075 = shalt.err (!%p1072_p0)
}
  0x21   :  { %42 = dma.hbm_to_vmem [thread:$0]  %s2204_s2, 192, %s40_s25, [#allocation6]  }
  0x22   :  { %1096 = dma.done.wait [#allocation3], 10752  }
  0x23   :  { %1097 = vsyncadd [#allocation3], 4294956544 }
  0x24   :  { %1098 = dma.done.wait [#allocation6], 384  }
  0x25   :  { %1099 = vsyncadd [#allocation6], 4294966912  ;;  %v1140_v0 = vld [vmem:[#allocation2 + $0xc0] sm:$0xff]  ;;  %v1142_v1 = vld [vmem:[#allocation2 + $0xc8] sm:$0xff]  ;;  %s1107_s0 = smov [#allocation8]  }
  0x26   :  { %v1144_v2 = vld [vmem:[#allocation2 + $0xd0] sm:$0xff]  ;;  %v162_v3 = vadd.f32 %v1142_v1, %v1140_v0  ;;  %v1148_v4 = vld [vmem:[#allocation2 + $0xd8] sm:$0xff]  ;;  %v1150_v5 = vld [vmem:[#allocation2 + $0xe0] sm:$0xff]  ;;  %s983_s2 = sshll.u32 %s1107_s0, 4  ;;  %s984_s2 = int_to_ptr.vmem [resolvable:$true] %s983_s2 }
  0x27   :  { %v1153_v7 = vld [vmem:[#allocation2] sm:$0xff]  ;;  %v1155_v8 = vld [vmem:[#allocation2 + $0x8] sm:$0xff]  ;;  %v1157_v9 = vld [vmem:[#allocation2 + $0x10] sm:$0xff]  ;;  %s1076_s28 = scalar_lea.vmem %s984_s2, 10752  ;;  %p1081_p2 = scmp.lt.s32.totalorder %s984_s2, %s984_s2 }
  0x28   :  { %v163_v6 = vadd.f32 %v162_v3, %v1144_v2  ;;  %v136_v11 = vadd.f32 %v1155_v8, %v1153_v7  ;;  %v1162_v12 = vld [vmem:[#allocation2 + $0xe8] sm:$0xff]  ;;  %v1164_v13 = vld [vmem:[#allocation2 + $0x18] sm:$0xff]  ;;  %v1166_v14 = vld [vmem:[#allocation2 + $0xf0] sm:$0xff]  ;;  %p1077_p1 = scmp.ne.s32.totalorder %s984_s2, %s1076_s28  ;;  %p1082_p3 = scmp.lt.s32.totalorder %s1076_s28, %s1076_s28 }
  0x29   :  { %v1169_v16 = vld [vmem:[#allocation2 + $0x20] sm:$0xff]  ;;  %v1174_v19 = vld [vmem:[#allocation2 + $0x128] sm:$0xff]  ;;  %v1176_v20 = vld [vmem:[#allocation2 + $0x130] sm:$0xff] }
  0x2a   :  { %v164_v10 = vadd.f32 %v163_v6, %v1148_v4  ;;  %v137_v17 = vadd.f32 %v136_v11, %v1157_v9  ;;  %v1172_v18 = vld [vmem:[#allocation2 + $0x120] sm:$0xff]  ;;  %v1182_v24 = vld [vmem:[#allocation2 + $0xf8] sm:$0xff]  ;;  %v1184_v25 = vld [vmem:[#allocation2 + $0x28] sm:$0xff]  ;;  %p1083_p4 = por %p1082_p3, %p1081_p2 }
  0x2b   :  { %v175_v23 = vadd.f32 %v1174_v19, %v1172_v18  ;;  %v1186_v26 = vld [vmem:[#allocation2 + $0x138] sm:$0xff]  ;;  %v1188_v27 = vld [vmem:[#allocation2 + $0x100] sm:$0xff]  ;;  %v1191_v29 = vld [vmem:[#allocation2 + $0x30] sm:$0xff] }
  0x2c   :  { %v165_v15 = vadd.f32 %v164_v10, %v1150_v5  ;;  %v138_v22 = vadd.f32 %v137_v17, %v1164_v13  ;;  %v1194_v31 = vld [vmem:[#allocation2 + $0x140] sm:$0xff]  ;;  %v1199_v34 = vld [vmem:[#allocation2 + $0x68] sm:$0xff]  ;;  %v1201_v35 = vld [vmem:[#allocation2 + $0x70] sm:$0xff]  ;;  %p1084_p5 = pnand %p1083_p4, %p1077_p1 }
  0x2d   :  { %v176_v32 = vadd.f32 %v175_v23, %v1176_v20  ;;  %v1197_v33 = vld [vmem:[#allocation2 + $0x60] sm:$0xff]  ;;  %v1203_v36 = vld [vmem:[#allocation2 + $0x108] sm:$0xff]  ;;  %v1210_v41 = vld [vmem:[#allocation2 + $0x38] sm:$0xff] }
  0x2e   :  { %v166_v21 = vadd.f32 %v165_v15, %v1162_v12  ;;  %v139_v30 = vadd.f32 %v138_v22, %v1169_v16  ;;  %v149_v40 = vadd.f32 %v1199_v34, %v1197_v33  ;;  %v1212_v42 = vld [vmem:[#allocation2 + $0x148] sm:$0xff]  ;;  %v1214_v43 = vld [vmem:[#allocation2 + $0x78] sm:$0xff]  ;;  %v1216_v44 = vld [vmem:[#allocation2 + $0x110] sm:$0xff] }
  0x2f   :  { %v177_v39 = vadd.f32 %v176_v32, %v1186_v26  ;;  %2298 = vst [vmem:[#allocation12_spill] sm:$0xff] %v1212_v42  ;;  %v1219_v46 = vld [vmem:[#allocation2 + $0x40] sm:$0xff]  ;;  %v1222_v48 = vld [vmem:[#allocation2 + $0x150] sm:$0xff]  ;;  %v1230_v53 = vld [vmem:[#allocation2 + $0x1e8] sm:$0xff] }
  0x30   :  { %v167_v28 = vadd.f32 %v166_v21, %v1166_v14  ;;  %v140_v38 = vadd.f32 %v139_v30, %v1184_v25  ;;  %2299 = vst [vmem:[#allocation13_spill] sm:$0xff] %v1222_v48  ;;  %v150_v50 = vadd.f32 %v149_v40, %v1201_v35  ;;  %v1226_v51 = vld [vmem:[#allocation2 + $0x80] sm:$0xff]  ;;  %2301 = vst [vmem:[#allocation15_spill] sm:$0xff] %v1230_v53  ;;  %v1232_v54 = vld [vmem:[#allocation2 + $0x118] sm:$0xff] }
  0x31   :  { %v178_v49 = vadd.f32 %v177_v39, %v1194_v31  ;;  %v1228_v52 = vld [vmem:[#allocation2 + $0x1e0] sm:$0xff]  ;;  %v1238_v59 = vld [vmem:[#allocation2 + $0x1f0] sm:$0xff]  ;;  %v1240_v60 = vld [vmem:[#allocation2 + $0x48] sm:$0xff] }
  0x32   :  { %v168_v37 = vadd.f32 %v167_v28, %v1182_v24  ;;  %v141_v47 = vadd.f32 %v140_v38, %v1191_v29  ;;  %2300 = vst [vmem:[#allocation14_spill] sm:$0xff] %v1228_v52  ;;  %v151_v58 = vadd.f32 %v150_v50, %v1214_v43  ;;  %2302 = vst [vmem:[#allocation16_spill] sm:$0xff] %v1238_v59  ;;  %v1242_v61 = vld [vmem:[#allocation2 + $0x158] sm:$0xff]  ;;  %v1244_v62 = vld [vmem:[#allocation2 + $0x88] sm:$0xff] }
  0x33   :  { %v179_v57 = vadd.f32 %v178_v49, %v1212_v42  ;;  %2303 = vst [vmem:[#allocation17_spill] sm:$0xff] %v1242_v61  ;;  %v201_v63 = vadd.f32 %v1230_v53, %v1228_v52  ;;  %v1249_v6 = vld [vmem:[#allocation2 + $0x50] sm:$0xff]  ;;  %v1252_v11 = vld [vmem:[#allocation2 + $0x160] sm:$0xff]  ;;  %v1256_v21 = vld [vmem:[#allocation2 + $0x1f8] sm:$0xff] }
  0x34   :  { %v169_v45 = vadd.f32 %v168_v37, %v1188_v27  ;;  %v142_v56 = vadd.f32 %v141_v47, %v1210_v41  ;;  %2304 = vst [vmem:[#allocation18_spill] sm:$0xff] %v1252_v11  ;;  %v152_v17 = vadd.f32 %v151_v58, %v1226_v51  ;;  %2305 = vst [vmem:[#allocation19_spill] sm:$0xff] %v1256_v21  ;;  %v1258_v22 = vld [vmem:[#allocation2 + $0x90] sm:$0xff]  ;;  %v1261_v28 = vld [vmem:[#allocation2 + $0x180] sm:$0xff] }
  0x35   :  { %v180_v15 = vadd.f32 %v179_v57, %v1222_v48  ;;  %v202_v23 = vadd.f32 %v201_v63, %v1238_v59  ;;  %v1263_v30 = vld [vmem:[#allocation2 + $0x188] sm:$0xff]  ;;  %v1266_v37 = vld [vmem:[#allocation2 + $0x58] sm:$0xff]  ;;  %v1273_v47 = vld [vmem:[#allocation2 + $0x190] sm:$0xff] }
  0x36   :  { %v170_v55 = vadd.f32 %v169_v45, %v1203_v36  ;;  %v143_v10 = vadd.f32 %v142_v56, %v1219_v46  ;;  %v153_v40 = vadd.f32 %v152_v17, %v1244_v62  ;;  %v1271_v45 = vld [vmem:[#allocation2 + $0x200] sm:$0xff]  ;;  %2307 = vst [vmem:[#allocation21_spill] sm:$0xff] %v1273_v47  ;;  %v1275_v49 = vld [vmem:[#allocation2 + $0x168] sm:$0xff]  ;;  %v1277_v50 = vld [vmem:[#allocation2 + $0x170] sm:$0xff]  ;;  %v188_v57 = vadd.f32 %v1263_v30, %v1261_v28 }
  0x37   :  { %v181_v39 = vadd.f32 %v180_v15, %v1242_v61  ;;  %2306 = vst [vmem:[#allocation20_spill] sm:$0xff] %v1271_v45  ;;  %2308 = vst [vmem:[#allocation22_spill] sm:$0xff] %v1275_v49  ;;  %v203_v56 = vadd.f32 %v202_v23, %v1256_v21  ;;  %v1289_v15 = vld [vmem:[#allocation2 + $0x208] sm:$0xff]  ;;  %v1291_v17 = vld [vmem:[#allocation2 + $0x198] sm:$0xff] }
  0x38   :  { %v171_v3 = vadd.f32 %v170_v55, %v1216_v44  ;;  %v144_v38 = vadd.f32 %v143_v10, %v1240_v60  ;;  %2309 = vst [vmem:[#allocation23_spill] sm:$0xff] %v1277_v50  ;;  %v1279_v55 = vld [vmem:[#allocation2 + $0x98] sm:$0xff]  ;;  %v154_v10 = vadd.f32 %v153_v40, %v1258_v22  ;;  %2310 = vst [vmem:[#allocation24_spill] sm:$0xff] %v1289_v15  ;;  %v1295_v21 = vld [vmem:[#allocation2 + $0x240] sm:$0xff] }
  0x39   :  { %v182_v63 = vadd.f32 %v181_v39, %v1252_v11  ;;  %2311 = vst [vmem:[#allocation25_spill] sm:$0xff] %v1291_v17  ;;  %v204_v59 = vadd.f32 %v203_v56, %v1271_v45  ;;  %v189_v23 = vadd.f32 %v188_v57, %v1273_v47  ;;  %2312 = vst [vmem:[#allocation26_spill] sm:$0xff] %v1295_v21  ;;  %v1297_v53 = vld [vmem:[#allocation2 + $0x248] sm:$0xff]  ;;  %v1304_v52 = vld [vmem:[#allocation2 + $0x210] sm:$0xff] }
  0x3a   :  { %v172_v32 = vadd.f32 %v171_v3, %v1232_v54  ;;  %v145_v58 = vadd.f32 %v144_v38, %v1249_v6  ;;  %v1286_v3 = vld [vmem:[#allocation2 + $0xa0] sm:$0xff]  ;;  %2313 = vst [vmem:[#allocation27_spill] sm:$0xff] %v1297_v53  ;;  %v155_v40 = vadd.f32 %v154_v10, %v1279_v55  ;;  %2315 = vst [vmem:[#allocation29_spill] sm:$0xff] %v1304_v52  ;;  %v1310_v57 = vld [vmem:[#allocation2 + $0x178] sm:$0xff] }
  0x3b   :  { %v183_v39 = vadd.f32 %v182_v63, %v1275_v49  ;;  %v1306_v11 = vld [vmem:[#allocation2 + $0x1a0] sm:$0xff]  ;;  %v214_v56 = vadd.f32 %v1297_v53, %v1295_v21  ;;  %2317 = vst [vmem:[#allocation31_spill] sm:$0xff] %v1310_v57  ;;  %v1312_v45 = vld [vmem:[#allocation2 + $0xa8] sm:$0xff]  ;;  %v205_v61 = vadd.f32 %v204_v59, %v1289_v15  ;;  %v190_v47 = vadd.f32 %v189_v23, %v1291_v17  ;;  %v1320_v49 = vld [vmem:[#allocation2 + $0x218] sm:$0xff] }
  0x3c   :  { %173 = vadd.xlane.f32.xlu1 %v172_v32  ;;  %v1299_v32 = vld [vmem:[#allocation2 + $0x250] sm:$0xff]  ;;  %v146_v38 = vadd.f32 %v145_v58, %v1266_v37  ;;  %2316 = vst [vmem:[#allocation30_spill] sm:$0xff] %v1306_v11  ;;  %v1316_v58 = vld [vmem:[#allocation2 + $0x258] sm:$0xff]  ;;  %v156_v10 = vadd.f32 %v155_v40, %v1286_v3  ;;  %2319 = vst [vmem:[#allocation33_spill] sm:$0xff] %v1320_v49 }
  0x3d   :  { %2314 = vst [vmem:[#allocation28_spill] sm:$0xff] %v1299_v32  ;;  %2318 = vst [vmem:[#allocation32_spill] sm:$0xff] %v1316_v58  ;;  %v184_v63 = vadd.f32 %v183_v39, %v1277_v50  ;;  %v1322_v48 = vld [vmem:[#allocation2 + $0x1a8] sm:$0xff]  ;;  %v215_v53 = vadd.f32 %v214_v56, %v1299_v32  ;;  %v1325_v21 = vld [vmem:[#allocation2 + $0xb0] sm:$0xff]  ;;  %v206_v42 = vadd.f32 %v205_v61, %v1304_v52 }
  0x3e   :  { %147 = vadd.xlane.f32.xlu0 %v146_v38  ;;  %2320 = vst [vmem:[#allocation34_spill] sm:$0xff] %v1322_v48  ;;  %v191_v59 = vadd.f32 %v190_v47, %v1306_v11  ;;  %v1329_v23 = vld [vmem:[#allocation2 + $0x260] sm:$0xff]  ;;  %v157_v39 = vadd.f32 %v156_v10, %v1312_v45  ;;  %v1335_v40 = vld [vmem:[#allocation2 + $0x1b0] sm:$0xff]  ;;  %v1338_v17 = vld [vmem:[#allocation2 + $0xb8] sm:$0xff] }
  0x3f   :  { %2321 = vst [vmem:[#allocation35_spill] sm:$0xff] %v1329_v23  ;;  %v185_v38 = vadd.f32 %v184_v63, %v1310_v57  ;;  %v1333_v15 = vld [vmem:[#allocation2 + $0x220] sm:$0xff]  ;;  %v216_v50 = vadd.f32 %v215_v53, %v1316_v58  ;;  %v207_v56 = vadd.f32 %v206_v42, %v1320_v49  ;;  %v1342_v32 = vld [vmem:[#allocation2 + $0x268] sm:$0xff]  ;;  %v1347_v10 = vld [vmem:[#allocation2 + $0x1b8] sm:$0xff] }
  0x40   :  { %2322 = vst [vmem:[#allocation36_spill] sm:$0xff] %v1333_v15  ;;  %v192_v61 = vadd.f32 %v191_v59, %v1322_v48  ;;  %2323 = vst [vmem:[#allocation37_spill] sm:$0xff] %v1342_v32  ;;  %v158_v47 = vadd.f32 %v157_v39, %v1325_v21  ;;  %v1345_v63 = vld [vmem:[#allocation2 + $0x228] sm:$0xff]  ;;  %v1352_v58 = vld [vmem:[#allocation2 + $0x270] sm:$0xff] }
  0x41   :  { %186 = vadd.xlane.f32.xlu1 %v185_v38  ;;  %2324 = vst [vmem:[#allocation38_spill] sm:$0xff] %v1345_v63  ;;  %v217_v52 = vadd.f32 %v216_v50, %v1329_v23  ;;  %v208_v57 = vadd.f32 %v207_v56, %v1333_v15  ;;  %2325 = vst [vmem:[#allocation39_spill] sm:$0xff] %v1352_v58  ;;  %v1355_v59 = vld [vmem:[#allocation2 + $0x230] sm:$0xff]  ;;  %v1357_v49 = vld [vmem:[#allocation2 + $0x1c0] sm:$0xff] }
  0x42   :  { %v193_v53 = vadd.f32 %v192_v61, %v1335_v40  ;;  %v159_v42 = vadd.f32 %v158_v47, %v1338_v17  ;;  %2326 = vst [vmem:[#allocation40_spill] sm:$0xff] %v1355_v59  ;;  %v1362_v11 = vld [vmem:[#allocation2 + $0x278] sm:$0xff]  ;;  %v1366_v56 = vld [vmem:[#allocation2 + $0x1c8] sm:$0xff]  ;;  %v1371_v15 = vld [vmem:[#allocation2 + $0x280] sm:$0xff] }
  0x43   :  { %v218_v38 = vadd.f32 %v217_v52, %v1342_v32  ;;  %v209_v39 = vadd.f32 %v208_v57, %v1345_v63  ;;  %2327 = vst [vmem:[#allocation41_spill] sm:$0xff] %v1362_v11  ;;  %v1364_v50 = vld [vmem:[#allocation2 + $0x238] sm:$0xff]  ;;  %2329 = vst [vmem:[#allocation43_spill] sm:$0xff] %v1371_v15  ;;  %v1373_v52 = vld [vmem:[#allocation2 + $0x1d0] sm:$0xff] }
  0x44   :  { %v194_v48 = vadd.f32 %v193_v53, %v1347_v10  ;;  %160 = vadd.xlane.f32.xlu0 %v159_v42  ;;  %2328 = vst [vmem:[#allocation42_spill] sm:$0xff] %v1364_v50  ;;  %v1378_v32 = vld [vmem:[#allocation2 + $0x288] sm:$0xff]  ;;  %v1380_v63 = vld [vmem:[#allocation2 + $0x1d8] sm:$0xff] }
  0x45   :  { %v219_v61 = vadd.f32 %v218_v38, %v1352_v58  ;;  %v210_v47 = vadd.f32 %v209_v39, %v1355_v59 }
  0x46   :  { %v195_v23 = vadd.f32 %v194_v48, %v1357_v49  ;;  %v1384_v48 = vld [vmem:[#allocation2 + $0x290] sm:$0xff] }
  0x47   :  { %v220_v57 = vadd.f32 %v219_v61, %v1362_v11  ;;  %v211_v53 = vadd.f32 %v210_v47, %v1364_v50  ;;  %v1388_v61 = vld [vmem:[#allocation2 + $0x298] sm:$0xff] }
  0x48   :  { %v196_v42 = vadd.f32 %v195_v23, %v1366_v56 }
  0x49   :  { %v221_v38 = vadd.f32 %v220_v57, %v1371_v15  ;;  %212 = vadd.xlane.f32.xlu1 %v211_v53 }
  0x4a   :  { %v197_v39 = vadd.f32 %v196_v42, %v1373_v52 }
  0x4b   :  { %v222_v58 = vadd.f32 %v221_v38, %v1378_v32 }
  0x4c   :  { %v198_v59 = vadd.f32 %v197_v39, %v1380_v63 }
  0x4d   :  { %v223_v47 = vadd.f32 %v222_v58, %v1384_v48 }
  0x4e   :  { %199 = vadd.xlane.f32.xlu0 %v198_v59 }
  0x4f   :  { %v224_v23 = vadd.f32 %v223_v47, %v1388_v61 }
  0x52   :  { %225 = vadd.xlane.f32.xlu0 %v224_v23 }
  0xc5   :  { %v174_v11 = vpop.xlane.xlu1 %173 }
  0xc6   :  { %v229_v50 = vmul.f32 0.0006510417, %v174_v11 }
  0xc7   :  { %v148_v57 = vpop.xlane.xlu0 %147 }
  0xc8   :  { %v227_v53 = vmul.f32 0.0006510417, %v148_v57  ;;  %v1399_v38 = vsub.f32 %v1140_v0, %v229_v50  ;;  %v1402_v39 = vsub.f32 %v1142_v1, %v229_v50  ;;  %v1418_v0 = vsub.f32 %v1148_v4, %v229_v50 }
  0xc9   :  { %v1421_v1 = vsub.f32 %v1150_v5, %v229_v50  ;;  %v1427_v23 = vsub.f32 %v1166_v14, %v229_v50  ;;  %v1430_v57 = vsub.f32 %v1182_v24, %v229_v50  ;;  %v1444_v14 = vsub.f32 %v1188_v27, %v229_v50 }
  0xca   :  { %v1393_v42 = vsub.f32 %v1153_v7, %v227_v53  ;;  %v1396_v15 = vsub.f32 %v1155_v8, %v227_v53  ;;  %2332 = vst [vmem:[#allocation46_spill] sm:$0xff] %v1399_v38  ;;  %2333 = vst [vmem:[#allocation47_spill] sm:$0xff] %v1402_v39  ;;  %v1405_v58 = vsub.f32 %v1157_v9, %v227_v53 }
  0xcb   :  { %v1412_v7 = vsub.f32 %v1144_v2, %v229_v50  ;;  %v1415_v8 = vsub.f32 %v1164_v13, %v227_v53  ;;  %2336 = vst [vmem:[#allocation50_spill] sm:$0xff] %v1421_v1  ;;  %v1424_v9 = vsub.f32 %v1162_v12, %v229_v50  ;;  %2338 = vst [vmem:[#allocation52_spill] sm:$0xff] %v1430_v57 }
  0xcc   :  { %2330 = vst [vmem:[#allocation44_spill] sm:$0xff] %v1393_v42  ;;  %2331 = vst [vmem:[#allocation45_spill] sm:$0xff] %v1396_v15  ;;  %v318_v11 = vmul.f32 %v1393_v42, %v1393_v42  ;;  %v319_v59 = vmul.f32 %v1396_v15, %v1396_v15  ;;  %v342_v2 = vmul.f32 %v1399_v38, %v1399_v38 }
  0xcd   :  { %2334 = vst [vmem:[#allocation48_spill] sm:$0xff] %v1405_v58  ;;  %2335 = vst [vmem:[#allocation49_spill] sm:$0xff] %v1412_v7  ;;  %v161_v47 = vpop.xlane.xlu0 %160  ;;  %v343_v4 = vmul.f32 %v1402_v39, %v1402_v39  ;;  %v1439_v5 = vsub.f32 %v1169_v16, %v227_v53  ;;  %v320_v12 = vmul.f32 %v1405_v58, %v1405_v58  ;;  %v187_v39 = vpop.xlane.xlu1 %186 }
  0xce   :  { %2337 = vst [vmem:[#allocation51_spill] sm:$0xff] %v1424_v9  ;;  %v1436_v13 = vmul.f32 0.0006510417, %v161_v47  ;;  %v402_v15 = vadd.f32 %v319_v59, %v318_v11  ;;  %v1447_v24 = vsub.f32 %v1203_v36, %v229_v50  ;;  %v1450_v38 = vsub.f32 %v1216_v44, %v229_v50 }
  0xcf   :  { %v344_v47 = vmul.f32 %v1412_v7, %v1412_v7  ;;  %v1455_v16 = vsub.f32 %v1184_v25, %v227_v53  ;;  %v321_v58 = vmul.f32 %v1415_v8, %v1415_v8  ;;  %v1460_v27 = vsub.f32 %v1232_v54, %v229_v50 }
  0xd0   :  { %v403_v11 = vadd.f32 %v402_v15, %v320_v12  ;;  %v1463_v36 = vsub.f32 %v1191_v29, %v227_v53  ;;  %v1466_v44 = vsub.f32 %v1210_v41, %v227_v53  ;;  %v345_v59 = vmul.f32 %v1418_v0, %v1418_v0 }
  0xd1   :  { %v428_v7 = vadd.f32 %v343_v4, %v342_v2  ;;  %v322_v25 = vmul.f32 %v1439_v5, %v1439_v5  ;;  %v1474_v15 = vsub.f32 %v1197_v33, %v1436_v13  ;;  %v1478_v54 = vsub.f32 %v1199_v34, %v1436_v13 }
  0xd2   :  { %v404_v42 = vadd.f32 %v403_v11, %v321_v58  ;;  %v1480_v29 = vmul.f32 0.0006510417, %v187_v39  ;;  %v1483_v41 = vsub.f32 %v1219_v46, %v227_v53  ;;  %v1486_v50 = vsub.f32 %v1240_v60, %v227_v53 }
  0xd3   :  { %2339 = vst [vmem:[#allocation53_spill] sm:$0xff] %v1474_v15  ;;  %2340 = vst [vmem:[#allocation54_spill] sm:$0xff] %v1478_v54  ;;  %v429_v2 = vadd.f32 %v428_v7, %v344_v47  ;;  %v1489_v4 = vsub.f32 %v1249_v6, %v227_v53  ;;  %v1492_v58 = vsub.f32 %v1266_v37, %v227_v53 }
  0xd4   :  { %v323_v33 = vmul.f32 %v1455_v16, %v1455_v16  ;;  %v405_v34 = vadd.f32 %v404_v42, %v322_v25  ;;  %v324_v39 = vmul.f32 %v1463_v36, %v1463_v36  ;;  %v325_v46 = vmul.f32 %v1466_v44, %v1466_v44 }
  0xd5   :  { %v346_v60 = vmul.f32 %v1421_v1, %v1421_v1  ;;  %v430_v7 = vadd.f32 %v429_v2, %v345_v59  ;;  %v1504_v6 = vsub.f32 %v1201_v35, %v1436_v13  ;;  %v330_v37 = vmul.f32 %v1474_v15, %v1474_v15 }
  0xd6   :  { %v406_v12 = vadd.f32 %v405_v34, %v323_v33  ;;  %v331_v53 = vmul.f32 %v1478_v54, %v1478_v54  ;;  %v326_v42 = vmul.f32 %v1483_v41, %v1483_v41  ;;  %v347_v47 = vmul.f32 %v1424_v9, %v1424_v9 }
  0xd7   :  { %v431_v11 = vadd.f32 %v430_v7, %v346_v60  ;;  %v1516_v59 = vsub.f32 %v1214_v43, %v1436_v13  ;;  %v327_v35 = vmul.f32 %v1486_v50, %v1486_v50  ;;  %v328_v25 = vmul.f32 %v1489_v4, %v1489_v4 }
  0xd8   :  { %v329_v2 = vmul.f32 %v1492_v58, %v1492_v58  ;;  %v407_v33 = vadd.f32 %v406_v12, %v324_v39  ;;  %v348_v34 = vmul.f32 %v1427_v23, %v1427_v23  ;;  %v349_v60 = vmul.f32 %v1430_v57, %v1430_v57 }
  0xd9   :  { %v350_v43 = vmul.f32 %v1444_v14, %v1444_v14  ;;  %v432_v7 = vadd.f32 %v431_v11, %v347_v47  ;;  %v1532_v15 = vsub.f32 %v1226_v51, %v1436_v13  ;;  %v332_v9 = vmul.f32 %v1504_v6, %v1504_v6 }
  0xda   :  { %v408_v54 = vadd.f32 %v407_v33, %v325_v46  ;;  %v415_v1 = vadd.f32 %v331_v53, %v330_v37  ;;  %v351_v39 = vmul.f32 %v1447_v24, %v1447_v24  ;;  %v1540_v57 = vsub.f32 %v1244_v62, %v1436_v13  ;;  %v200_v46 = vpop.xlane.xlu0 %199 }
  0xdb   :  { %v433_v12 = vadd.f32 %v432_v7, %v348_v34  ;;  %v333_v47 = vmul.f32 %v1516_v59, %v1516_v59  ;;  %v1546_v51 = vsub.f32 %v1172_v18, %v1480_v29  ;;  %v1550_v37 = vsub.f32 %v1174_v19, %v1480_v29 }
  0xdc   :  { %v409_v11 = vadd.f32 %v408_v54, %v326_v42  ;;  %v416_v33 = vadd.f32 %v415_v1, %v332_v9  ;;  %v352_v53 = vmul.f32 %v1450_v38, %v1450_v38  ;;  %v1556_v62 = vsub.f32 %v1258_v22, %v1436_v13 }
  0xdd   :  { %2341 = vst [vmem:[#allocation55_spill] sm:$0xff] %v1546_v51  ;;  %2342 = vst [vmem:[#allocation56_spill] sm:$0xff] %v1550_v37  ;;  %v434_v34 = vadd.f32 %v433_v12, %v349_v60  ;;  %v1560_v54 = vsub.f32 %v1279_v55, %v1436_v13  ;;  %v334_v18 = vmul.f32 %v1532_v15, %v1532_v15  ;;  %v1568_v42 = vmul.f32 0.0006510417, %v200_v46 }
  0xde   :  { %v410_v1 = vadd.f32 %v409_v11, %v327_v35  ;;  %v417_v9 = vadd.f32 %v416_v33, %v333_v47  ;;  %v1566_v19 = vsub.f32 %v1176_v20, %v1480_v29  ;;  %v335_v22 = vmul.f32 %v1540_v57, %v1540_v57 }
  0xdf   :  { %v435_v60 = vadd.f32 %v434_v34, %v350_v43  ;;  %v1574_v7 = vsub.f32 %v1186_v26, %v1480_v29  ;;  %v354_v12 = vmul.f32 %v1546_v51, %v1546_v51  ;;  %v355_v47 = vmul.f32 %v1550_v37, %v1550_v37  ;;  %v2365_v37 = vld [vmem:[#allocation34_spill] sm:$0xff] }
  0xe0   :  { %2343 = vst [vmem:[#allocation57_spill] sm:$0xff] %v1566_v19  ;;  %v411_v55 = vadd.f32 %v410_v1, %v328_v25  ;;  %v418_v35 = vadd.f32 %v417_v9, %v334_v18  ;;  %v353_v20 = vmul.f32 %v1460_v27, %v1460_v27  ;;  %v1584_v43 = vsub.f32 %v1286_v3, %v1436_v13  ;;  %v213_v25 = vpop.xlane.xlu1 %212  ;;  %v2367_v51 = vld [vmem:[#allocation14_spill] sm:$0xff] }
  0xe1   :  { %2344 = vst [vmem:[#allocation58_spill] sm:$0xff] %v1574_v7  ;;  %v436_v46 = vadd.f32 %v435_v60, %v351_v39  ;;  %v1588_v26 = vsub.f32 %v1312_v45, %v1436_v13  ;;  %v336_v33 = vmul.f32 %v1556_v62, %v1556_v62  ;;  %v356_v1 = vmul.f32 %v1566_v19, %v1566_v19 }
  0xe2   :  { %v412_v11 = vadd.f32 %v411_v55, %v329_v2  ;;  %v419_v34 = vadd.f32 %v418_v35, %v335_v22  ;;  %v1596_v39 = vsub.f32 %v1325_v21, %v1436_v13  ;;  %v337_v3 = vmul.f32 %v1560_v54, %v1560_v54  ;;  %v226_v35 = vpop.xlane.xlu0 %225 }
  0xe3   :  { %v437_v18 = vadd.f32 %v436_v46, %v352_v53  ;;  %v1602_v45 = vsub.f32 %v1194_v31, %v1480_v29  ;;  %v357_v9 = vmul.f32 %v1574_v7, %v1574_v7  ;;  %v441_v60 = vadd.f32 %v355_v47, %v354_v12  ;;  %v2349_v47 = vld [vmem:[#allocation12_spill] sm:$0xff]  ;;  %v2361_v7 = vld [vmem:[#allocation22_spill] sm:$0xff] }
  0xe4   :  { %413 = vadd.xlane.f32.xlu1 %v412_v11  ;;  %v420_v2 = vadd.f32 %v419_v34, %v336_v33  ;;  %v1608_v53 = vsub.f32 %v1261_v28, %v1568_v42  ;;  %v1610_v22 = vmul.f32 0.0006510417, %v213_v25  ;;  %v1614_v21 = vsub.f32 %v1338_v17, %v1436_v13  ;;  %v2351_v13 = vld [vmem:[#allocation13_spill] sm:$0xff] }
  0xe5   :  { %2345 = vst [vmem:[#allocation59_spill] sm:$0xff] %v1602_v45  ;;  %v338_v31 = vmul.f32 %v1584_v43, %v1584_v43  ;;  %v1620_v55 = vsub.f32 %v1263_v30, %v1568_v42  ;;  %v438_v46 = vadd.f32 %v437_v18, %v353_v20  ;;  %v1624_v28 = vsub.f32 %v2349_v47, %v1480_v29  ;;  %v2353_v18 = vld [vmem:[#allocation21_spill] sm:$0xff] }
  0xe6   :  { %2346 = vst [vmem:[#allocation60_spill] sm:$0xff] %v1608_v53  ;;  %2347 = vst [vmem:[#allocation61_spill] sm:$0xff] %v1614_v21  ;;  %v421_v12 = vadd.f32 %v420_v2, %v337_v3  ;;  %v442_v25 = vadd.f32 %v441_v60, %v356_v1  ;;  %v339_v11 = vmul.f32 %v1588_v26, %v1588_v26  ;;  %v1642_v2 = vmul.f32 0.0006510417, %v226_v35  ;;  %v2355_v47 = vld [vmem:[#allocation17_spill] sm:$0xff]  ;;  %v2359_v35 = vld [vmem:[#allocation18_spill] sm:$0xff] }
  0xe7   :  { %2348 = vst [vmem:[#allocation62_spill] sm:$0xff] %v1620_v55  ;;  %2350 = vst [vmem:[#allocation12_spill] sm:$0xff] %v1624_v28  ;;  %v340_v17 = vmul.f32 %v1596_v39, %v1596_v39  ;;  %v1632_v33 = vsub.f32 %v2351_v13, %v1480_v29  ;;  %v358_v30 = vmul.f32 %v1602_v45, %v1602_v45 }
  0xe8   :  { %439 = vadd.xlane.f32.xlu1 %v438_v46  ;;  %v422_v20 = vadd.f32 %v421_v12, %v338_v31  ;;  %v443_v34 = vadd.f32 %v442_v25, %v357_v9  ;;  %v1638_v3 = vsub.f32 %v2353_v18, %v1568_v42  ;;  %v366_v1 = vmul.f32 %v1608_v53, %v1608_v53  ;;  %v2357_v25 = vld [vmem:[#allocation25_spill] sm:$0xff] }
  0xe9   :  { %2352 = vst [vmem:[#allocation13_spill] sm:$0xff] %v1632_v33  ;;  %v341_v60 = vmul.f32 %v1614_v21, %v1614_v21  ;;  %v1648_v13 = vsub.f32 %v2355_v47, %v1480_v29  ;;  %v367_v31 = vmul.f32 %v1620_v55, %v1620_v55  ;;  %v359_v46 = vmul.f32 %v1624_v28, %v1624_v28 }
  0xea   :  { %2354 = vst [vmem:[#allocation21_spill] sm:$0xff] %v1638_v3  ;;  %v423_v9 = vadd.f32 %v422_v20, %v339_v11  ;;  %v444_v12 = vadd.f32 %v443_v34, %v358_v30  ;;  %v1656_v18 = vsub.f32 %v2357_v25, %v1568_v42  ;;  %v1660_v45 = vsub.f32 %v2359_v35, %v1480_v29  ;;  %v2363_v11 = vld [vmem:[#allocation30_spill] sm:$0xff] }
  0xeb   :  { %2356 = vst [vmem:[#allocation17_spill] sm:$0xff] %v1648_v13  ;;  %v1664_v47 = vsub.f32 %v2361_v7, %v1480_v29  ;;  %v360_v19 = vmul.f32 %v1632_v33, %v1632_v33  ;;  %v1670_v20 = vsub.f32 %v2363_v11, %v1568_v42  ;;  %v368_v25 = vmul.f32 %v1638_v3, %v1638_v3  ;;  %v2369_v11 = vld [vmem:[#allocation15_spill] sm:$0xff] }
  0xec   :  { %2358 = vst [vmem:[#allocation25_spill] sm:$0xff] %v1656_v18  ;;  %2360 = vst [vmem:[#allocation18_spill] sm:$0xff] %v1660_v45  ;;  %v424_v30 = vadd.f32 %v423_v9, %v340_v17  ;;  %v445_v34 = vadd.f32 %v444_v12, %v359_v46  ;;  %v454_v28 = vadd.f32 %v367_v31, %v366_v1  ;;  %v2371_v46 = vld [vmem:[#allocation23_spill] sm:$0xff] }
  0xed   :  { %2362 = vst [vmem:[#allocation22_spill] sm:$0xff] %v1664_v47  ;;  %2364 = vst [vmem:[#allocation30_spill] sm:$0xff] %v1670_v20  ;;  %v361_v35 = vmul.f32 %v1648_v13, %v1648_v13  ;;  %v1678_v7 = vsub.f32 %v2365_v37, %v1568_v42  ;;  %v1682_v33 = vsub.f32 %v2367_v51, %v1610_v22  ;;  %v2373_v37 = vld [vmem:[#allocation31_spill] sm:$0xff] }
  0xee   :  { %v1686_v55 = vsub.f32 %v2369_v11, %v1610_v22  ;;  %v425_v17 = vadd.f32 %v424_v30, %v341_v60  ;;  %v446_v9 = vadd.f32 %v445_v34, %v360_v19  ;;  %v369_v1 = vmul.f32 %v1656_v18, %v1656_v18  ;;  %v2375_v11 = vld [vmem:[#allocation16_spill] sm:$0xff]  ;;  %v2379_v34 = vld [vmem:[#allocation19_spill] sm:$0xff] }
  0xef   :  { %2366 = vst [vmem:[#allocation34_spill] sm:$0xff] %v1678_v7  ;;  %2368 = vst [vmem:[#allocation14_spill] sm:$0xff] %v1682_v33  ;;  %v455_v31 = vadd.f32 %v454_v28, %v368_v25  ;;  %v1692_v12 = vsub.f32 %v2371_v46, %v1480_v29  ;;  %v1696_v13 = vsub.f32 %v2373_v37, %v1480_v29 }
  0xf0   :  { %2370 = vst [vmem:[#allocation15_spill] sm:$0xff] %v1686_v55  ;;  %v362_v51 = vmul.f32 %v1660_v45, %v1660_v45  ;;  %v1702_v3 = vsub.f32 %v2375_v11, %v1610_v22  ;;  %426 = vadd.xlane.f32.xlu0 %v425_v17  ;;  %v447_v19 = vadd.f32 %v446_v9, %v361_v35 }
  0xf1   :  { %2372 = vst [vmem:[#allocation23_spill] sm:$0xff] %v1692_v12  ;;  %2374 = vst [vmem:[#allocation31_spill] sm:$0xff] %v1696_v13  ;;  %v1706_v28 = vsub.f32 %v1335_v40, %v1568_v42  ;;  %v370_v60 = vmul.f32 %v1670_v20, %v1670_v20  ;;  %v456_v30 = vadd.f32 %v455_v31, %v369_v1  ;;  %v2422_v20 = vld [vmem:[#allocation44_spill] sm:$0xff] }
  0xf2   :  { %2376 = vst [vmem:[#allocation16_spill] sm:$0xff] %v1702_v3  ;;  %v1712_v29 = vsub.f32 %v1347_v10, %v1568_v42  ;;  %v1716_v25 = vsub.f32 %v2379_v34, %v1610_v22  ;;  %v378_v17 = vmul.f32 %v1682_v33, %v1682_v33  ;;  %v379_v35 = vmul.f32 %v1686_v55, %v1686_v55  ;;  %v2383_v55 = vld [vmem:[#allocation20_spill] sm:$0xff] }
  0xf3   :  { %2377 = vst [vmem:[#allocation63_spill] sm:$0xff] %v1706_v28  ;;  %v363_v40 = vmul.f32 %v1664_v47, %v1664_v47  ;;  %v448_v9 = vadd.f32 %v447_v19, %v362_v51  ;;  %v371_v1 = vmul.f32 %v1678_v7, %v1678_v7  ;;  %v457_v31 = vadd.f32 %v456_v30, %v370_v60 }
  0xf4   :  { %2378 = vst [vmem:[#allocation64_spill] sm:$0xff] %v1712_v29  ;;  %2380 = vst [vmem:[#allocation19_spill] sm:$0xff] %v1716_v25  ;;  %v364_v10 = vmul.f32 %v1692_v12, %v1692_v12  ;;  %v365_v46 = vmul.f32 %v1696_v13, %v1696_v13  ;;  %v1732_v37 = vsub.f32 %v1357_v49, %v1568_v42  ;;  %v2387_v12 = vld [vmem:[#allocation27_spill] sm:$0xff] }
  0xf5   :  { %v380_v11 = vmul.f32 %v1702_v3, %v1702_v3  ;;  %v449_v34 = vadd.f32 %v448_v9, %v363_v40  ;;  %v1738_v51 = vsub.f32 %v1366_v56, %v1568_v42  ;;  %v372_v19 = vmul.f32 %v1706_v28, %v1706_v28  ;;  %v2385_v56 = vld [vmem:[#allocation26_spill] sm:$0xff] }
  0xf6   :  { %2381 = vst [vmem:[#allocation65_spill] sm:$0xff] %v1732_v37  ;;  %v458_v60 = vadd.f32 %v457_v31, %v371_v1  ;;  %v373_v30 = vmul.f32 %v1712_v29, %v1712_v29  ;;  %v1746_v33 = vsub.f32 %v2383_v55, %v1610_v22  ;;  %v381_v49 = vmul.f32 %v1716_v25, %v1716_v25  ;;  %v2390_v55 = vld [vmem:[#allocation24_spill] sm:$0xff] }
  0xf7   :  { %2382 = vst [vmem:[#allocation66_spill] sm:$0xff] %v1738_v51  ;;  %v467_v3 = vadd.f32 %v379_v35, %v378_v17  ;;  %v450_v40 = vadd.f32 %v449_v34, %v364_v10  ;;  %v1752_v13 = vsub.f32 %v2385_v56, %v1642_v2  ;;  %v1756_v1 = vsub.f32 %v2387_v12, %v1642_v2 }
  0xf8   :  { %2384 = vst [vmem:[#allocation20_spill] sm:$0xff] %v1746_v33  ;;  %v459_v9 = vadd.f32 %v458_v60, %v372_v19  ;;  %v1760_v31 = vsub.f32 %v1373_v52, %v1568_v42  ;;  %v1764_v47 = vsub.f32 %v2390_v55, %v1610_v22  ;;  %v1768_v35 = vsub.f32 %v1380_v63, %v1568_v42  ;;  %v2393_v52 = vld [vmem:[#allocation29_spill] sm:$0xff]  ;;  %v2395_v63 = vld [vmem:[#allocation28_spill] sm:$0xff] }
  0xf9   :  { %2386 = vst [vmem:[#allocation26_spill] sm:$0xff] %v1752_v13  ;;  %2388 = vst [vmem:[#allocation27_spill] sm:$0xff] %v1756_v1  ;;  %v468_v25 = vadd.f32 %v467_v3, %v380_v11  ;;  %v451_v17 = vadd.f32 %v450_v40, %v365_v46  ;;  %v374_v10 = vmul.f32 %v1732_v37, %v1732_v37  ;;  %v2397_v40 = vld [vmem:[#allocation33_spill] sm:$0xff] }
  0xfa   :  { %2389 = vst [vmem:[#allocation67_spill] sm:$0xff] %v1760_v31  ;;  %2391 = vst [vmem:[#allocation24_spill] sm:$0xff] %v1764_v47  ;;  %v460_v34 = vadd.f32 %v459_v9, %v373_v30  ;;  %v375_v12 = vmul.f32 %v1738_v51, %v1738_v51  ;;  %v1776_v19 = vsub.f32 %v2393_v52, %v1610_v22  ;;  %v2401_v52 = vld [vmem:[#allocation36_spill] sm:$0xff] }
  0xfb   :  { %2392 = vst [vmem:[#allocation68_spill] sm:$0xff] %v1768_v35  ;;  %v382_v60 = vmul.f32 %v1746_v33, %v1746_v33  ;;  %v469_v3 = vadd.f32 %v468_v25, %v381_v49  ;;  %452 = vadd.xlane.f32.xlu0 %v451_v17  ;;  %v1782_v42 = vsub.f32 %v2395_v63, %v1642_v2  ;;  %v2399_v17 = vld [vmem:[#allocation32_spill] sm:$0xff] }
  0xfc   :  { %2394 = vst [vmem:[#allocation29_spill] sm:$0xff] %v1776_v19  ;;  %v461_v46 = vadd.f32 %v460_v34, %v374_v10  ;;  %v390_v11 = vmul.f32 %v1752_v13, %v1752_v13  ;;  %v391_v30 = vmul.f32 %v1756_v1, %v1756_v1  ;;  %v1790_v9 = vsub.f32 %v2397_v40, %v1610_v22 }
  0xfd   :  { %2396 = vst [vmem:[#allocation28_spill] sm:$0xff] %v1782_v42  ;;  %v383_v56 = vmul.f32 %v1764_v47, %v1764_v47  ;;  %v470_v25 = vadd.f32 %v469_v3, %v382_v60  ;;  %v376_v49 = vmul.f32 %v1760_v31, %v1760_v31  ;;  %v1798_v10 = vsub.f32 %v2399_v17, %v1642_v2  ;;  %v2403_v3 = vld [vmem:[#allocation35_spill] sm:$0xff]  ;;  %v2405_v17 = vld [vmem:[#allocation38_spill] sm:$0xff] }
  0xfe   :  { %2398 = vst [vmem:[#allocation33_spill] sm:$0xff] %v1790_v9  ;;  %v462_v55 = vadd.f32 %v461_v46, %v375_v12  ;;  %v377_v34 = vmul.f32 %v1768_v35, %v1768_v35  ;;  %v1804_v63 = vsub.f32 %v2401_v52, %v1610_v22  ;;  %v384_v40 = vmul.f32 %v1776_v19, %v1776_v19  ;;  %v598_v19 = vld [vmem:[#allocation5] sm:$0xff] }
  0xff   :  { %2400 = vst [vmem:[#allocation32_spill] sm:$0xff] %v1798_v10  ;;  %v471_v47 = vadd.f32 %v470_v25, %v383_v56  ;;  %v1810_v33 = vsub.f32 %v2403_v3, %v1642_v2  ;;  %v392_v12 = vmul.f32 %v1782_v42, %v1782_v42  ;;  %v480_v46 = vadd.f32 %v391_v30, %v390_v11  ;;  %v2407_v56 = vld [vmem:[#allocation37_spill] sm:$0xff]  ;;  %v2409_v3 = vld [vmem:[#allocation40_spill] sm:$0xff] }
 0x100   :  { %2402 = vst [vmem:[#allocation36_spill] sm:$0xff] %v1804_v63  ;;  %v463_v60 = vadd.f32 %v462_v55, %v376_v49  ;;  %v1816_v1 = vsub.f32 %v2405_v17, %v1610_v22  ;;  %v385_v52 = vmul.f32 %v1790_v9, %v1790_v9  ;;  %v1822_v25 = vsub.f32 %v2407_v56, %v1642_v2  ;;  %v2413_v56 = vld [vmem:[#allocation42_spill] sm:$0xff] }
 0x101   :  { %2404 = vst [vmem:[#allocation35_spill] sm:$0xff] %v1810_v33  ;;  %v472_v13 = vadd.f32 %v471_v47, %v384_v40  ;;  %v393_v49 = vmul.f32 %v1798_v10, %v1798_v10  ;;  %v481_v55 = vadd.f32 %v480_v46, %v392_v12  ;;  %v1828_v11 = vsub.f32 %v2409_v3, %v1610_v22  ;;  %v2411_v47 = vld [vmem:[#allocation39_spill] sm:$0xff] }
 0x102   :  { %2406 = vst [vmem:[#allocation38_spill] sm:$0xff] %v1816_v1  ;;  %v464_v45 = vadd.f32 %v463_v60, %v377_v34  ;;  %2408 = vst [vmem:[#allocation37_spill] sm:$0xff] %v1822_v25  ;;  %v386_v30 = vmul.f32 %v1804_v63, %v1804_v63  ;;  %v1834_v34 = vsub.f32 %v2411_v47, %v1642_v2  ;;  %v2415_v63 = vld [vmem:[#allocation41_spill] sm:$0xff] }
 0x103   :  { %2410 = vst [vmem:[#allocation40_spill] sm:$0xff] %v1828_v11  ;;  %v473_v17 = vadd.f32 %v472_v13, %v385_v52  ;;  %v394_v40 = vmul.f32 %v1810_v33, %v1810_v33  ;;  %v482_v60 = vadd.f32 %v481_v55, %v393_v49  ;;  %v1840_v12 = vsub.f32 %v2413_v56, %v1610_v22  ;;  %v2417_v55 = vld [vmem:[#allocation43_spill] sm:$0xff] }
 0x104   :  { %465 = vadd.xlane.f32.xlu1 %v464_v45  ;;  %2412 = vst [vmem:[#allocation39_spill] sm:$0xff] %v1834_v34  ;;  %v387_v46 = vmul.f32 %v1816_v1, %v1816_v1  ;;  %v1846_v13 = vsub.f32 %v2415_v63, %v1642_v2  ;;  %v395_v45 = vmul.f32 %v1822_v25, %v1822_v25 }
 0x105   :  { %2414 = vst [vmem:[#allocation42_spill] sm:$0xff] %v1840_v12  ;;  %v474_v3 = vadd.f32 %v473_v17, %v386_v30  ;;  %v483_v52 = vadd.f32 %v482_v60, %v394_v40  ;;  %v388_v47 = vmul.f32 %v1828_v11, %v1828_v11  ;;  %v1854_v22 = vsub.f32 %v2417_v55, %v1642_v2 }
 0x106   :  { %2416 = vst [vmem:[#allocation41_spill] sm:$0xff] %v1846_v13  ;;  %v396_v56 = vmul.f32 %v1834_v34, %v1834_v34  ;;  %v389_v63 = vmul.f32 %v1840_v12, %v1840_v12  ;;  %v1862_v1 = vsub.f32 %v1378_v32, %v1642_v2  ;;  %v397_v40 = vmul.f32 %v1846_v13, %v1846_v13  ;;  %v747_v34 = vld [vmem:[#allocation7 + $0x8] sm:$0xf] }
 0x107   :  { %v475_v49 = vadd.f32 %v474_v3, %v387_v46  ;;  %2418 = vst [vmem:[#allocation43_spill] sm:$0xff] %v1854_v22  ;;  %v484_v30 = vadd.f32 %v483_v52, %v395_v45  ;;  %v1868_v3 = vsub.f32 %v1384_v48, %v1642_v2  ;;  %v398_v45 = vmul.f32 %v1854_v22, %v1854_v22 }
 0x108   :  { %2419 = vst [vmem:[#allocation69_spill] sm:$0xff] %v1862_v1  ;;  %v399_v32 = vmul.f32 %v1862_v1, %v1862_v1 }
 0x109   :  { %v476_v17 = vadd.f32 %v475_v49, %v388_v47  ;;  %v485_v60 = vadd.f32 %v484_v30, %v396_v56  ;;  %2420 = vst [vmem:[#allocation70_spill] sm:$0xff] %v1868_v3  ;;  %v1874_v47 = vsub.f32 %v1388_v61, %v1642_v2  ;;  %v400_v55 = vmul.f32 %v1868_v3, %v1868_v3 }
 0x10b   :  { %v477_v46 = vadd.f32 %v476_v17, %v389_v63  ;;  %v486_v52 = vadd.f32 %v485_v60, %v397_v40  ;;  %2421 = vst [vmem:[#allocation71_spill] sm:$0xff] %v1874_v47  ;;  %v401_v48 = vmul.f32 %v1874_v47, %v1874_v47  ;;  %v602_v17 = vlaneseq }
 0x10d   :  { %478 = vadd.xlane.f32.xlu0 %v477_v46  ;;  %v487_v49 = vadd.f32 %v486_v52, %v398_v45  ;;  %v603_v61 = vshrl.u32 %v602_v17, 7  ;;  %v746_v17 = vld [vmem:[#allocation7] sm:$0xff] }
 0x10f   :  { %v488_v56 = vadd.f32 %v487_v49, %v399_v32  ;;  %v604_v11 = vsub.s32 0, %v603_v61  ;;  %v608_v45 = vsub.s32 1, %v603_v61  ;;  %v612_v52 = vsub.s32 2, %v603_v61 }
 0x110   :  { %v616_v32 = vsub.s32 3, %v603_v61  ;;  %v620_v49 = vsub.s32 4, %v603_v61  ;;  %v624_v3 = vsub.s32 5, %v603_v61  ;;  %v628_v47 = vsub.s32 6, %v603_v61 }
 0x111   :  { %v489_v30 = vadd.f32 %v488_v56, %v400_v55  ;;  %v632_v55 = vsub.s32 7, %v603_v61  ;;  %v599_v56 = vld [vmem:[#allocation5 + $0x8] sm:$0xf]  ;;  %v1906_v33 = vrot.slane %v746_v17, %v604_v11  ;;  %v1908_v42 = vrot.slane %v746_v17, %v608_v45 }
 0x112   :  { %v1894_v1 = vrot.slane %v598_v19, %v628_v47  ;;  %v1898_v22 = vrot.slane %v599_v56, %v604_v11  ;;  %v1900_v13 = vrot.slane %v599_v56, %v608_v45  ;;  %v1902_v25 = vrot.slane %v599_v56, %v612_v52 }
 0x113   :  { %v490_v63 = vadd.f32 %v489_v30, %v401_v48  ;;  %v1882_v48 = vrot.slane %v598_v19, %v604_v11  ;;  %v1884_v30 = vrot.slane %v598_v19, %v608_v45  ;;  %v1896_v61 = vrot.slane %v598_v19, %v632_v55 }
 0x114   :  { %v1910_v35 = vrot.slane %v746_v17, %v612_v52  ;;  %v1916_v31 = vrot.slane %v746_v17, %v624_v3  ;;  %v1918_v51 = vrot.slane %v746_v17, %v628_v47  ;;  %v1920_v37 = vrot.slane %v746_v17, %v632_v55 }
 0x115   :  { %491 = vadd.xlane.f32.xlu1 %v490_v63  ;;  %v1886_v63 = vrot.slane %v598_v19, %v612_v52  ;;  %v1922_v29 = vrot.slane %v747_v34, %v604_v11  ;;  %v1924_v28 = vrot.slane %v747_v34, %v608_v45  ;;  %v1928_v7 = vrot.slane %v747_v34, %v616_v32 }
 0x16d   :  { %v414_v40 = vpop.xlane.xlu1 %413 }
 0x16e   :  { %v493_v60 = vmul.f32 0.0006510417, %v414_v40 }
 0x170   :  { %v500_v46 = vadd.f32 1e-05, %v493_v60  ;;  %v1888_v60 = vrot.slane %v598_v19, %v616_v32 }
 0x171   :  { %v440_v2 = vpop.xlane.xlu1 %439 }
 0x172   :  { %1002 = vrsqrt.f32 %v500_v46  ;;  %v495_v12 = vmul.f32 0.0006510417, %v440_v2  ;;  %v1890_v46 = vrot.slane %v598_v19, %v620_v49 }
 0x174   :  { %v502_v9 = vadd.f32 1e-05, %v495_v12  ;;  %v1892_v12 = vrot.slane %v598_v19, %v624_v3  ;;  %v1914_v19 = vrot.slane %v746_v17, %v620_v49  ;;  %v2423_v49 = vld [vmem:[#allocation45_spill] sm:$0xff]  ;;  %v2424_v3 = vld [vmem:[#allocation48_spill] sm:$0xff] }
 0x176   :  { %1004 = vrsqrt.f32 %v502_v9  ;;  %v1904_v9 = vrot.slane %v599_v56, %v616_v32 }
 0x179   :  { %v427_v40 = vpop.xlane.xlu0 %426 }
 0x17a   :  { %v494_v2 = vmul.f32 0.0006510417, %v427_v40  ;;  %v1912_v40 = vrot.slane %v746_v17, %v616_v32 }
 0x17c   :  { %v501_v10 = vadd.f32 1e-05, %v494_v2  ;;  %v1926_v2 = vrot.slane %v747_v34, %v612_v52 }
 0x17e   :  { %1006 = vrsqrt.f32 %v501_v10 }
 0x17f   :  { %v1003_v56 = vpop.eup %1002 }
 0x180   :  { %v514_v18 = vmul.f32 %v1003_v56, %v2422_v20  ;;  %v515_v53 = vmul.f32 %v1003_v56, %v2423_v49  ;;  %v516_v21 = vmul.f32 %v1003_v56, %v2424_v3  ;;  %v517_v47 = vmul.f32 %v1003_v56, %v1415_v8 }
 0x181   :  { %v518_v55 = vmul.f32 %v1003_v56, %v1439_v5  ;;  %v519_v11 = vmul.f32 %v1003_v56, %v1455_v16  ;;  %v520_v45 = vmul.f32 %v1003_v56, %v1463_v36  ;;  %v521_v52 = vmul.f32 %v1003_v56, %v1466_v44 }
 0x182   :  { %v522_v34 = vmul.f32 %v1003_v56, %v1483_v41  ;;  %v523_v10 = vmul.f32 %v1003_v56, %v1486_v50  ;;  %v524_v20 = vmul.f32 %v1003_v56, %v1489_v4  ;;  %v525_v32 = vmul.f32 %v1003_v56, %v1492_v58 }
 0x183   :  { %v662_v17 = vmul.f32 %v1882_v48, %v514_v18  ;;  %v663_v8 = vmul.f32 %v1884_v30, %v515_v53  ;;  %v664_v5 = vmul.f32 %v1886_v63, %v516_v21  ;;  %v665_v16 = vmul.f32 %v1888_v60, %v517_v47  ;;  %v1005_v56 = vpop.eup %1004 }
 0x184   :  { %v666_v36 = vmul.f32 %v1890_v46, %v518_v55  ;;  %v667_v44 = vmul.f32 %v1892_v12, %v519_v11  ;;  %v668_v41 = vmul.f32 %v1894_v1, %v520_v45  ;;  %v669_v50 = vmul.f32 %v1896_v61, %v521_v52 }
 0x185   :  { %v670_v4 = vmul.f32 %v1898_v22, %v522_v34  ;;  %v671_v58 = vmul.f32 %v1900_v13, %v523_v10  ;;  %v672_v18 = vmul.f32 %v1902_v25, %v524_v20  ;;  %v673_v53 = vmul.f32 %v1904_v9, %v525_v32 }
 0x186   :  { %v810_v21 = vadd.f32 %v1906_v33, %v662_v17  ;;  %v811_v49 = vadd.f32 %v1908_v42, %v663_v8  ;;  %v812_v3 = vadd.f32 %v1910_v35, %v664_v5  ;;  %v813_v47 = vadd.f32 %v1912_v40, %v665_v16  ;;  %v2425_v17 = vld [vmem:[#allocation46_spill] sm:$0xff]  ;;  %v2426_v5 = vld [vmem:[#allocation47_spill] sm:$0xff] }
 0x187   :  { %v814_v55 = vadd.f32 %v1914_v19, %v666_v36  ;;  %v815_v11 = vadd.f32 %v1916_v31, %v667_v44  ;;  %v816_v45 = vadd.f32 %v1918_v51, %v668_v41  ;;  %v817_v52 = vadd.f32 %v1920_v37, %v669_v50  ;;  %v2427_v36 = vld [vmem:[#allocation49_spill] sm:$0xff]  ;;  %v2428_v50 = vld [vmem:[#allocation50_spill] sm:$0xff] }
 0x188   :  { %v818_v34 = vadd.f32 %v1922_v29, %v670_v4  ;;  %v819_v10 = vadd.f32 %v1924_v28, %v671_v58  ;;  %v820_v20 = vadd.f32 %v1926_v2, %v672_v18  ;;  %v821_v32 = vadd.f32 %v1928_v7, %v673_v53  ;;  %894 = vst [vmem:[#allocation8] sm:$0xff] %v810_v21  ;;  %v2429_v58 = vld [vmem:[#allocation51_spill] sm:$0xff]  ;;  %v2430_v21 = vld [vmem:[#allocation52_spill] sm:$0xff] }
 0x189   :  { %895 = vst [vmem:[#allocation8 + $0x8] sm:$0xff] %v811_v49  ;;  %896 = vst [vmem:[#allocation8 + $0x10] sm:$0xff] %v812_v3  ;;  %v538_v8 = vmul.f32 %v1005_v56, %v2425_v17  ;;  %v539_v16 = vmul.f32 %v1005_v56, %v2426_v5  ;;  %v540_v44 = vmul.f32 %v1005_v56, %v2427_v36 }
 0x18a   :  { %897 = vst [vmem:[#allocation8 + $0x18] sm:$0xff] %v813_v47  ;;  %898 = vst [vmem:[#allocation8 + $0x20] sm:$0xff] %v814_v55  ;;  %v541_v41 = vmul.f32 %v1005_v56, %v1418_v0  ;;  %v542_v4 = vmul.f32 %v1005_v56, %v2428_v50  ;;  %v543_v18 = vmul.f32 %v1005_v56, %v2429_v58 }
 0x18b   :  { %899 = vst [vmem:[#allocation8 + $0x28] sm:$0xff] %v815_v11  ;;  %900 = vst [vmem:[#allocation8 + $0x30] sm:$0xff] %v816_v45  ;;  %v544_v53 = vmul.f32 %v1005_v56, %v1427_v23  ;;  %v545_v49 = vmul.f32 %v1005_v56, %v2430_v21  ;;  %v546_v3 = vmul.f32 %v1005_v56, %v1444_v14  ;;  %v1007_v11 = vpop.eup %1006  ;;  %v2431_v21 = vld [vmem:[#allocation53_spill] sm:$0xff] }
 0x18c   :  { %901 = vst [vmem:[#allocation8 + $0x38] sm:$0xff] %v817_v52  ;;  %902 = vst [vmem:[#allocation8 + $0x40] sm:$0xff] %v818_v34  ;;  %v547_v47 = vmul.f32 %v1005_v56, %v1447_v24  ;;  %v548_v55 = vmul.f32 %v1005_v56, %v1450_v38  ;;  %v549_v0 = vmul.f32 %v1005_v56, %v1460_v27 }
 0x18d   :  { %903 = vst [vmem:[#allocation8 + $0x48] sm:$0xff] %v819_v10  ;;  %904 = vst [vmem:[#allocation8 + $0x50] sm:$0xff] %v820_v20  ;;  %v686_v45 = vmul.f32 %v1882_v48, %v538_v8  ;;  %v687_v52 = vmul.f32 %v1884_v30, %v539_v16  ;;  %v688_v34 = vmul.f32 %v1886_v63, %v540_v44 }
 0x18e   :  { %905 = vst [vmem:[#allocation8 + $0x58] sm:$0xff] %v821_v32  ;;  %v689_v10 = vmul.f32 %v1888_v60, %v541_v41  ;;  %v690_v23 = vmul.f32 %v1890_v46, %v542_v4  ;;  %v691_v20 = vmul.f32 %v1892_v12, %v543_v18  ;;  %v692_v14 = vmul.f32 %v1894_v1, %v544_v53 }
 0x18f   :  { %v693_v24 = vmul.f32 %v1896_v61, %v545_v49  ;;  %v694_v38 = vmul.f32 %v1898_v22, %v546_v3  ;;  %v695_v27 = vmul.f32 %v1900_v13, %v547_v47  ;;  %v696_v56 = vmul.f32 %v1902_v25, %v548_v55  ;;  %v2432_v3 = vld [vmem:[#allocation54_spill] sm:$0xff] }
 0x190   :  { %v697_v32 = vmul.f32 %v1904_v9, %v549_v0  ;;  %v834_v17 = vadd.f32 %v1906_v33, %v686_v45  ;;  %v835_v8 = vadd.f32 %v1908_v42, %v687_v52  ;;  %v836_v5 = vadd.f32 %v1910_v35, %v688_v34 }
 0x191   :  { %v837_v16 = vadd.f32 %v1912_v40, %v689_v10  ;;  %v838_v36 = vadd.f32 %v1914_v19, %v690_v23  ;;  %v839_v44 = vadd.f32 %v1916_v31, %v691_v20  ;;  %v840_v41 = vadd.f32 %v1918_v51, %v692_v14  ;;  %v2433_v14 = vld [vmem:[#allocation61_spill] sm:$0xff] }
 0x192   :  { %v841_v50 = vadd.f32 %v1920_v37, %v693_v24  ;;  %v842_v4 = vadd.f32 %v1922_v29, %v694_v38  ;;  %v843_v58 = vadd.f32 %v1924_v28, %v695_v27  ;;  %v844_v18 = vadd.f32 %v1926_v2, %v696_v56  ;;  %918 = vst [vmem:[#allocation8 + $0xc0] sm:$0xff] %v834_v17 }
 0x193   :  { %v845_v53 = vadd.f32 %v1928_v7, %v697_v32  ;;  %919 = vst [vmem:[#allocation8 + $0xc8] sm:$0xff] %v835_v8  ;;  %920 = vst [vmem:[#allocation8 + $0xd0] sm:$0xff] %v836_v5  ;;  %v526_v49 = vmul.f32 %v1007_v11, %v2431_v21  ;;  %v527_v47 = vmul.f32 %v1007_v11, %v2432_v3  ;;  %v453_v21 = vpop.xlane.xlu0 %452 }
 0x194   :  { %921 = vst [vmem:[#allocation8 + $0xd8] sm:$0xff] %v837_v16  ;;  %922 = vst [vmem:[#allocation8 + $0xe0] sm:$0xff] %v838_v36  ;;  %v528_v55 = vmul.f32 %v1007_v11, %v1504_v6  ;;  %v529_v0 = vmul.f32 %v1007_v11, %v1516_v59  ;;  %v530_v45 = vmul.f32 %v1007_v11, %v1532_v15  ;;  %v466_v16 = vpop.xlane.xlu1 %465 }
 0x195   :  { %923 = vst [vmem:[#allocation8 + $0xe8] sm:$0xff] %v839_v44  ;;  %924 = vst [vmem:[#allocation8 + $0xf0] sm:$0xff] %v840_v41  ;;  %v531_v52 = vmul.f32 %v1007_v11, %v1540_v57  ;;  %v532_v34 = vmul.f32 %v1007_v11, %v1556_v62  ;;  %v533_v10 = vmul.f32 %v1007_v11, %v1560_v54 }
 0x196   :  { %925 = vst [vmem:[#allocation8 + $0xf8] sm:$0xff] %v841_v50  ;;  %926 = vst [vmem:[#allocation8 + $0x100] sm:$0xff] %v842_v4  ;;  %v534_v23 = vmul.f32 %v1007_v11, %v1584_v43  ;;  %v535_v20 = vmul.f32 %v1007_v11, %v1588_v26  ;;  %v536_v6 = vmul.f32 %v1007_v11, %v1596_v39 }
 0x197   :  { %927 = vst [vmem:[#allocation8 + $0x108] sm:$0xff] %v843_v58  ;;  %928 = vst [vmem:[#allocation8 + $0x110] sm:$0xff] %v844_v18  ;;  %v537_v59 = vmul.f32 %v1007_v11, %v2433_v14  ;;  %v674_v24 = vmul.f32 %v1882_v48, %v526_v49  ;;  %v675_v38 = vmul.f32 %v1884_v30, %v527_v47  ;;  %v497_v49 = vmul.f32 0.0006510417, %v466_v16 }
 0x198   :  { %929 = vst [vmem:[#allocation8 + $0x118] sm:$0xff] %v845_v53  ;;  %v676_v15 = vmul.f32 %v1886_v63, %v528_v55  ;;  %v677_v57 = vmul.f32 %v1888_v60, %v529_v0  ;;  %v678_v62 = vmul.f32 %v1890_v46, %v530_v45  ;;  %v679_v54 = vmul.f32 %v1892_v12, %v531_v52  ;;  %v479_v55 = vpop.xlane.xlu0 %478 }
 0x199   :  { %v680_v43 = vmul.f32 %v1894_v1, %v532_v34  ;;  %v681_v26 = vmul.f32 %v1896_v61, %v533_v10  ;;  %v682_v39 = vmul.f32 %v1898_v22, %v534_v23  ;;  %v683_v11 = vmul.f32 %v1900_v13, %v535_v20 }
 0x19a   :  { %v684_v27 = vmul.f32 %v1902_v25, %v536_v6  ;;  %v685_v56 = vmul.f32 %v1904_v9, %v537_v59  ;;  %v822_v32 = vadd.f32 %v1906_v33, %v674_v24  ;;  %v823_v17 = vadd.f32 %v1908_v42, %v675_v38  ;;  %v2434_v6 = vld [vmem:[#allocation60_spill] sm:$0xff]  ;;  %v2435_v59 = vld [vmem:[#allocation62_spill] sm:$0xff]  ;;  %v2436_v38 = vld [vmem:[#allocation21_spill] sm:$0xff] }
 0x19b   :  { %v824_v8 = vadd.f32 %v1910_v35, %v676_v15  ;;  %v825_v5 = vadd.f32 %v1912_v40, %v677_v57  ;;  %v826_v36 = vadd.f32 %v1914_v19, %v678_v62  ;;  %v827_v44 = vadd.f32 %v1916_v31, %v679_v54  ;;  %v2437_v57 = vld [vmem:[#allocation25_spill] sm:$0xff]  ;;  %v2438_v54 = vld [vmem:[#allocation30_spill] sm:$0xff] }
 0x19c   :  { %v828_v41 = vadd.f32 %v1918_v51, %v680_v43  ;;  %v829_v50 = vadd.f32 %v1920_v37, %v681_v26  ;;  %v830_v4 = vadd.f32 %v1922_v29, %v682_v39  ;;  %v831_v58 = vadd.f32 %v1924_v28, %v683_v11  ;;  %906 = vst [vmem:[#allocation8 + $0x60] sm:$0xff] %v822_v32  ;;  %v2439_v26 = vld [vmem:[#allocation34_spill] sm:$0xff]  ;;  %v2440_v11 = vld [vmem:[#allocation63_spill] sm:$0xff] }
 0x19d   :  { %v832_v18 = vadd.f32 %v1926_v2, %v684_v27  ;;  %v833_v53 = vadd.f32 %v1928_v7, %v685_v56  ;;  %907 = vst [vmem:[#allocation8 + $0x68] sm:$0xff] %v823_v17  ;;  %908 = vst [vmem:[#allocation8 + $0x70] sm:$0xff] %v824_v8  ;;  %v504_v3 = vadd.f32 1e-05, %v497_v49  ;;  %v496_v47 = vmul.f32 0.0006510417, %v453_v21 }
 0x19e   :  { %909 = vst [vmem:[#allocation8 + $0x78] sm:$0xff] %v825_v5  ;;  %910 = vst [vmem:[#allocation8 + $0x80] sm:$0xff] %v826_v36  ;;  %v492_v0 = vpop.xlane.xlu1 %491  ;;  %v498_v52 = vmul.f32 0.0006510417, %v479_v55  ;;  %v2441_v56 = vld [vmem:[#allocation64_spill] sm:$0xff]  ;;  %v2442_v17 = vld [vmem:[#allocation65_spill] sm:$0xff] }
 0x19f   :  { %911 = vst [vmem:[#allocation8 + $0x88] sm:$0xff] %v827_v44  ;;  %912 = vst [vmem:[#allocation8 + $0x90] sm:$0xff] %v828_v41  ;;  %1008 = vrsqrt.f32 %v504_v3  ;;  %v503_v45 = vadd.f32 1e-05, %v496_v47  ;;  %v499_v34 = vmul.f32 0.0006510417, %v492_v0 }
 0x1a0   :  { %913 = vst [vmem:[#allocation8 + $0x98] sm:$0xff] %v829_v50  ;;  %914 = vst [vmem:[#allocation8 + $0xa0] sm:$0xff] %v830_v4  ;;  %v505_v10 = vadd.f32 1e-05, %v498_v52  ;;  %v2443_v5 = vld [vmem:[#allocation66_spill] sm:$0xff]  ;;  %v2444_v36 = vld [vmem:[#allocation67_spill] sm:$0xff] }
 0x1a1   :  { %915 = vst [vmem:[#allocation8 + $0xa8] sm:$0xff] %v831_v58  ;;  %916 = vst [vmem:[#allocation8 + $0xb0] sm:$0xff] %v832_v18  ;;  %1010 = vrsqrt.f32 %v503_v45  ;;  %v506_v23 = vadd.f32 1e-05, %v499_v34  ;;  %v2445_v41 = vld [vmem:[#allocation68_spill] sm:$0xff] }
 0x1a2   :  { %917 = vst [vmem:[#allocation8 + $0xb8] sm:$0xff] %v833_v53  ;;  %1012 = vrsqrt.f32 %v505_v10 }
 0x1a3   :  { %1014 = vrsqrt.f32 %v506_v23 }
 0x1ac   :  { %v1009_v20 = vpop.eup %1008 }
 0x1ad   :  { %v562_v14 = vmul.f32 %v1009_v20, %v2434_v6  ;;  %v563_v24 = vmul.f32 %v1009_v20, %v2435_v59  ;;  %v564_v15 = vmul.f32 %v1009_v20, %v2436_v38  ;;  %v565_v62 = vmul.f32 %v1009_v20, %v2437_v57 }
 0x1ae   :  { %v566_v43 = vmul.f32 %v1009_v20, %v2438_v54  ;;  %v567_v39 = vmul.f32 %v1009_v20, %v2439_v26  ;;  %v568_v27 = vmul.f32 %v1009_v20, %v2440_v11  ;;  %v569_v32 = vmul.f32 %v1009_v20, %v2441_v56  ;;  %v1011_v34 = vpop.eup %1010 }
 0x1af   :  { %v570_v8 = vmul.f32 %v1009_v20, %v2442_v17  ;;  %v571_v16 = vmul.f32 %v1009_v20, %v2443_v5  ;;  %v572_v44 = vmul.f32 %v1009_v20, %v2444_v36  ;;  %v573_v50 = vmul.f32 %v1009_v20, %v2445_v41 }
 0x1b0   :  { %v710_v4 = vmul.f32 %v1882_v48, %v562_v14  ;;  %v711_v58 = vmul.f32 %v1884_v30, %v563_v24  ;;  %v712_v18 = vmul.f32 %v1886_v63, %v564_v15  ;;  %v713_v53 = vmul.f32 %v1888_v60, %v565_v62 }
 0x1b1   :  { %v714_v21 = vmul.f32 %v1890_v46, %v566_v43  ;;  %v715_v49 = vmul.f32 %v1892_v12, %v567_v39  ;;  %v716_v3 = vmul.f32 %v1894_v1, %v568_v27  ;;  %v717_v47 = vmul.f32 %v1896_v61, %v569_v32  ;;  %v2446_v43 = vld [vmem:[#allocation55_spill] sm:$0xff]  ;;  %v2447_v39 = vld [vmem:[#allocation56_spill] sm:$0xff]  ;;  %v2448_v27 = vld [vmem:[#allocation57_spill] sm:$0xff] }
 0x1b2   :  { %v718_v55 = vmul.f32 %v1898_v22, %v570_v8  ;;  %v719_v0 = vmul.f32 %v1900_v13, %v571_v16  ;;  %v720_v45 = vmul.f32 %v1902_v25, %v572_v44  ;;  %v721_v52 = vmul.f32 %v1904_v9, %v573_v50  ;;  %v2449_v32 = vld [vmem:[#allocation58_spill] sm:$0xff]  ;;  %v2450_v8 = vld [vmem:[#allocation59_spill] sm:$0xff]  ;;  %v2451_v16 = vld [vmem:[#allocation12_spill] sm:$0xff] }
 0x1b3   :  { %v858_v10 = vadd.f32 %v1906_v33, %v710_v4  ;;  %v859_v23 = vadd.f32 %v1908_v42, %v711_v58  ;;  %v860_v20 = vadd.f32 %v1910_v35, %v712_v18  ;;  %v861_v6 = vadd.f32 %v1912_v40, %v713_v53  ;;  %v2452_v44 = vld [vmem:[#allocation13_spill] sm:$0xff]  ;;  %v2082_v58 = vpop.eup %1012  ;;  %v2454_v18 = vld [vmem:[#allocation18_spill] sm:$0xff] }
 0x1b4   :  { %v862_v14 = vadd.f32 %v1914_v19, %v714_v21  ;;  %v863_v59 = vadd.f32 %v1916_v31, %v715_v49  ;;  %v864_v24 = vadd.f32 %v1918_v51, %v716_v3  ;;  %v865_v38 = vadd.f32 %v1920_v37, %v717_v47  ;;  %v2453_v50 = vld [vmem:[#allocation17_spill] sm:$0xff]  ;;  %v2455_v21 = vld [vmem:[#allocation22_spill] sm:$0xff]  ;;  %v2456_v3 = vld [vmem:[#allocation23_spill] sm:$0xff] }
 0x1b5   :  { %v866_v15 = vadd.f32 %v1922_v29, %v718_v55  ;;  %v867_v57 = vadd.f32 %v1924_v28, %v719_v0  ;;  %v868_v62 = vadd.f32 %v1926_v2, %v720_v45  ;;  %v869_v54 = vadd.f32 %v1928_v7, %v721_v52  ;;  %942 = vst [vmem:[#allocation8 + $0x180] sm:$0xff] %v858_v10  ;;  %v2457_v55 = vld [vmem:[#allocation31_spill] sm:$0xff]  ;;  %v1015_v45 = vpop.eup %1014 }
 0x1b6   :  { %943 = vst [vmem:[#allocation8 + $0x188] sm:$0xff] %v859_v23  ;;  %944 = vst [vmem:[#allocation8 + $0x190] sm:$0xff] %v860_v20  ;;  %v550_v26 = vmul.f32 %v1011_v34, %v2446_v43  ;;  %v551_v11 = vmul.f32 %v1011_v34, %v2447_v39  ;;  %v552_v56 = vmul.f32 %v1011_v34, %v2448_v27 }
 0x1b7   :  { %945 = vst [vmem:[#allocation8 + $0x198] sm:$0xff] %v861_v6  ;;  %946 = vst [vmem:[#allocation8 + $0x1a0] sm:$0xff] %v862_v14  ;;  %v553_v17 = vmul.f32 %v1011_v34, %v2449_v32  ;;  %v554_v5 = vmul.f32 %v1011_v34, %v2450_v8  ;;  %v555_v36 = vmul.f32 %v1011_v34, %v2451_v16  ;;  %v2458_v16 = vld [vmem:[#allocation26_spill] sm:$0xff] }
 0x1b8   :  { %947 = vst [vmem:[#allocation8 + $0x1a8] sm:$0xff] %v863_v59  ;;  %948 = vst [vmem:[#allocation8 + $0x1b0] sm:$0xff] %v864_v24  ;;  %v556_v41 = vmul.f32 %v1011_v34, %v2452_v44  ;;  %v557_v4 = vmul.f32 %v1011_v34, %v2453_v50  ;;  %v558_v53 = vmul.f32 %v1011_v34, %v2454_v18  ;;  %v2459_v44 = vld [vmem:[#allocation27_spill] sm:$0xff]  ;;  %v2460_v50 = vld [vmem:[#allocation28_spill] sm:$0xff] }
 0x1b9   :  { %949 = vst [vmem:[#allocation8 + $0x1b8] sm:$0xff] %v865_v38  ;;  %950 = vst [vmem:[#allocation8 + $0x1c0] sm:$0xff] %v866_v15  ;;  %v559_v49 = vmul.f32 %v1011_v34, %v2455_v21  ;;  %v560_v47 = vmul.f32 %v1011_v34, %v2456_v3  ;;  %v561_v0 = vmul.f32 %v1011_v34, %v2457_v55  ;;  %v2461_v18 = vld [vmem:[#allocation32_spill] sm:$0xff]  ;;  %v2462_v21 = vld [vmem:[#allocation35_spill] sm:$0xff] }
 0x1ba   :  { %951 = vst [vmem:[#allocation8 + $0x1c8] sm:$0xff] %v867_v57  ;;  %952 = vst [vmem:[#allocation8 + $0x1d0] sm:$0xff] %v868_v62  ;;  %v698_v52 = vmul.f32 %v1882_v48, %v550_v26  ;;  %v699_v10 = vmul.f32 %v1884_v30, %v551_v11  ;;  %v700_v23 = vmul.f32 %v1886_v63, %v552_v56  ;;  %v2463_v3 = vld [vmem:[#allocation37_spill] sm:$0xff]  ;;  %v2464_v55 = vld [vmem:[#allocation39_spill] sm:$0xff] }
 0x1bb   :  { %953 = vst [vmem:[#allocation8 + $0x1d8] sm:$0xff] %v869_v54  ;;  %v701_v20 = vmul.f32 %v1888_v60, %v553_v17  ;;  %v702_v6 = vmul.f32 %v1890_v46, %v554_v5  ;;  %v703_v14 = vmul.f32 %v1892_v12, %v555_v36  ;;  %v704_v59 = vmul.f32 %v1894_v1, %v556_v41 }
 0x1bc   :  { %v705_v24 = vmul.f32 %v1896_v61, %v557_v4  ;;  %v706_v38 = vmul.f32 %v1898_v22, %v558_v53  ;;  %v707_v34 = vmul.f32 %v1900_v13, %v559_v49  ;;  %v708_v15 = vmul.f32 %v1902_v25, %v560_v47 }
 0x1bd   :  { %v709_v57 = vmul.f32 %v1904_v9, %v561_v0  ;;  %v846_v62 = vadd.f32 %v1906_v33, %v698_v52  ;;  %v847_v54 = vadd.f32 %v1908_v42, %v699_v10  ;;  %v848_v43 = vadd.f32 %v1910_v35, %v700_v23  ;;  %v2465_v52 = vld [vmem:[#allocation41_spill] sm:$0xff]  ;;  %v2466_v23 = vld [vmem:[#allocation43_spill] sm:$0xff] }
 0x1be   :  { %v849_v26 = vadd.f32 %v1912_v40, %v701_v20  ;;  %v850_v39 = vadd.f32 %v1914_v19, %v702_v6  ;;  %v851_v11 = vadd.f32 %v1916_v31, %v703_v14  ;;  %v852_v27 = vadd.f32 %v1918_v51, %v704_v59  ;;  %v2467_v6 = vld [vmem:[#allocation69_spill] sm:$0xff]  ;;  %v2468_v59 = vld [vmem:[#allocation70_spill] sm:$0xff] }
 0x1bf   :  { %v853_v56 = vadd.f32 %v1920_v37, %v705_v24  ;;  %v854_v32 = vadd.f32 %v1922_v29, %v706_v38  ;;  %v855_v17 = vadd.f32 %v1924_v28, %v707_v34  ;;  %v856_v8 = vadd.f32 %v1926_v2, %v708_v15  ;;  %930 = vst [vmem:[#allocation8 + $0x120] sm:$0xff] %v846_v62  ;;  %v2469_v38 = vld [vmem:[#allocation71_spill] sm:$0xff] }
 0x1c0   :  { %v857_v5 = vadd.f32 %v1928_v7, %v709_v57  ;;  %931 = vst [vmem:[#allocation8 + $0x128] sm:$0xff] %v847_v54  ;;  %932 = vst [vmem:[#allocation8 + $0x130] sm:$0xff] %v848_v43  ;;  %v586_v36 = vmul.f32 %v1015_v45, %v2458_v16  ;;  %v587_v41 = vmul.f32 %v1015_v45, %v2459_v44 }
 0x1c1   :  { %933 = vst [vmem:[#allocation8 + $0x138] sm:$0xff] %v849_v26  ;;  %934 = vst [vmem:[#allocation8 + $0x140] sm:$0xff] %v850_v39  ;;  %v588_v4 = vmul.f32 %v1015_v45, %v2460_v50  ;;  %v589_v53 = vmul.f32 %v1015_v45, %v2461_v18  ;;  %v590_v49 = vmul.f32 %v1015_v45, %v2462_v21 }
 0x1c2   :  { %935 = vst [vmem:[#allocation8 + $0x148] sm:$0xff] %v851_v11  ;;  %936 = vst [vmem:[#allocation8 + $0x150] sm:$0xff] %v852_v27  ;;  %v591_v47 = vmul.f32 %v1015_v45, %v2463_v3  ;;  %v592_v0 = vmul.f32 %v1015_v45, %v2464_v55  ;;  %v593_v10 = vmul.f32 %v1015_v45, %v2465_v52 }
 0x1c3   :  { %937 = vst [vmem:[#allocation8 + $0x158] sm:$0xff] %v853_v56  ;;  %938 = vst [vmem:[#allocation8 + $0x160] sm:$0xff] %v854_v32  ;;  %v594_v20 = vmul.f32 %v1015_v45, %v2466_v23  ;;  %v595_v14 = vmul.f32 %v1015_v45, %v2467_v6  ;;  %v596_v24 = vmul.f32 %v1015_v45, %v2468_v59 }
 0x1c4   :  { %939 = vst [vmem:[#allocation8 + $0x168] sm:$0xff] %v855_v17  ;;  %940 = vst [vmem:[#allocation8 + $0x170] sm:$0xff] %v856_v8  ;;  %v597_v34 = vmul.f32 %v1015_v45, %v2469_v38  ;;  %v734_v15 = vmul.f32 %v1882_v48, %v586_v36  ;;  %v735_v57 = vmul.f32 %v1884_v30, %v587_v41 }
 0x1c5   :  { %941 = vst [vmem:[#allocation8 + $0x178] sm:$0xff] %v857_v5  ;;  %v736_v62 = vmul.f32 %v1886_v63, %v588_v4  ;;  %v737_v54 = vmul.f32 %v1888_v60, %v589_v53  ;;  %v738_v43 = vmul.f32 %v1890_v46, %v590_v49  ;;  %v739_v26 = vmul.f32 %v1892_v12, %v591_v47  ;;  %v2470_v49 = vld [vmem:[#allocation14_spill] sm:$0xff]  ;;  %v2471_v47 = vld [vmem:[#allocation15_spill] sm:$0xff] }
 0x1c6   :  { %v740_v39 = vmul.f32 %v1894_v1, %v592_v0  ;;  %v741_v11 = vmul.f32 %v1896_v61, %v593_v10  ;;  %v742_v27 = vmul.f32 %v1898_v22, %v594_v20  ;;  %v743_v45 = vmul.f32 %v1900_v13, %v595_v14  ;;  %v2472_v0 = vld [vmem:[#allocation16_spill] sm:$0xff]  ;;  %v2473_v10 = vld [vmem:[#allocation19_spill] sm:$0xff] }
 0x1c7   :  { %v744_v56 = vmul.f32 %v1902_v25, %v596_v24  ;;  %v745_v32 = vmul.f32 %v1904_v9, %v597_v34  ;;  %v882_v17 = vadd.f32 %v1906_v33, %v734_v15  ;;  %v883_v8 = vadd.f32 %v1908_v42, %v735_v57  ;;  %v2474_v20 = vld [vmem:[#allocation20_spill] sm:$0xff]  ;;  %v2476_v24 = vld [vmem:[#allocation29_spill] sm:$0xff] }
 0x1c8   :  { %v884_v5 = vadd.f32 %v1910_v35, %v736_v62  ;;  %v885_v16 = vadd.f32 %v1912_v40, %v737_v54  ;;  %v886_v36 = vadd.f32 %v1914_v19, %v738_v43  ;;  %v887_v44 = vadd.f32 %v1916_v31, %v739_v26  ;;  %v2475_v14 = vld [vmem:[#allocation24_spill] sm:$0xff]  ;;  %v2477_v34 = vld [vmem:[#allocation33_spill] sm:$0xff]  ;;  %v2479_v54 = vld [vmem:[#allocation38_spill] sm:$0xff] }
 0x1c9   :  { %v888_v41 = vadd.f32 %v1918_v51, %v740_v39  ;;  %v889_v50 = vadd.f32 %v1920_v37, %v741_v11  ;;  %v890_v4 = vadd.f32 %v1922_v29, %v742_v27  ;;  %v891_v18 = vadd.f32 %v1924_v28, %v743_v45  ;;  %966 = vst [vmem:[#allocation8 + $0x240] sm:$0xff] %v882_v17  ;;  %v2478_v57 = vld [vmem:[#allocation36_spill] sm:$0xff]  ;;  %v2481_v11 = vld [vmem:[#allocation42_spill] sm:$0xff] }
 0x1ca   :  { %v892_v53 = vadd.f32 %v1926_v2, %v744_v56  ;;  %v893_v21 = vadd.f32 %v1928_v7, %v745_v32  ;;  %967 = vst [vmem:[#allocation8 + $0x248] sm:$0xff] %v883_v8  ;;  %968 = vst [vmem:[#allocation8 + $0x250] sm:$0xff] %v884_v5  ;;  %v574_v3 = vmul.f32 %v2082_v58, %v2470_v49  ;;  %v2480_v26 = vld [vmem:[#allocation40_spill] sm:$0xff] }
 0x1cb   :  { %969 = vst [vmem:[#allocation8 + $0x258] sm:$0xff] %v885_v16  ;;  %970 = vst [vmem:[#allocation8 + $0x260] sm:$0xff] %v886_v36  ;;  %v575_v55 = vmul.f32 %v2082_v58, %v2471_v47  ;;  %v576_v52 = vmul.f32 %v2082_v58, %v2472_v0  ;;  %v577_v23 = vmul.f32 %v2082_v58, %v2473_v10 }
 0x1cc   :  { %971 = vst [vmem:[#allocation8 + $0x268] sm:$0xff] %v887_v44  ;;  %972 = vst [vmem:[#allocation8 + $0x270] sm:$0xff] %v888_v41  ;;  %v578_v6 = vmul.f32 %v2082_v58, %v2474_v20  ;;  %v579_v59 = vmul.f32 %v2082_v58, %v2475_v14  ;;  %v580_v38 = vmul.f32 %v2082_v58, %v2476_v24 }
 0x1cd   :  { %973 = vst [vmem:[#allocation8 + $0x278] sm:$0xff] %v889_v50  ;;  %974 = vst [vmem:[#allocation8 + $0x280] sm:$0xff] %v890_v4  ;;  %v581_v15 = vmul.f32 %v2082_v58, %v2477_v34  ;;  %v582_v62 = vmul.f32 %v2082_v58, %v2478_v57  ;;  %v583_v43 = vmul.f32 %v2082_v58, %v2479_v54 }
 0x1ce   :  { %975 = vst [vmem:[#allocation8 + $0x288] sm:$0xff] %v891_v18  ;;  %976 = vst [vmem:[#allocation8 + $0x290] sm:$0xff] %v892_v53  ;;  %v584_v39 = vmul.f32 %v2082_v58, %v2480_v26  ;;  %v585_v27 = vmul.f32 %v2082_v58, %v2481_v11  ;;  %v722_v45 = vmul.f32 %v1882_v48, %v574_v3 }
 0x1cf   :  { %977 = vst [vmem:[#allocation8 + $0x298] sm:$0xff] %v893_v21  ;;  %v723_v56 = vmul.f32 %v1884_v30, %v575_v55  ;;  %v724_v32 = vmul.f32 %v1886_v63, %v576_v52  ;;  %v725_v17 = vmul.f32 %v1888_v60, %v577_v23  ;;  %v726_v8 = vmul.f32 %v1890_v46, %v578_v6 }
 0x1d0   :  { %v727_v5 = vmul.f32 %v1892_v12, %v579_v59  ;;  %v728_v16 = vmul.f32 %v1894_v1, %v580_v38  ;;  %v729_v36 = vmul.f32 %v1896_v61, %v581_v15  ;;  %v730_v44 = vmul.f32 %v1898_v22, %v582_v62 }
 0x1d1   :  { %v731_v58 = vmul.f32 %v1900_v13, %v583_v43  ;;  %v732_v48 = vmul.f32 %v1902_v25, %v584_v39  ;;  %v733_v30 = vmul.f32 %v1904_v9, %v585_v27  ;;  %v870_v63 = vadd.f32 %v1906_v33, %v722_v45 }
 0x1d2   :  { %v871_v60 = vadd.f32 %v1908_v42, %v723_v56  ;;  %v872_v46 = vadd.f32 %v1910_v35, %v724_v32  ;;  %v873_v1 = vadd.f32 %v1912_v40, %v725_v17  ;;  %v874_v12 = vadd.f32 %v1914_v19, %v726_v8 }
 0x1d3   :  { %v875_v22 = vadd.f32 %v1916_v31, %v727_v5  ;;  %v876_v13 = vadd.f32 %v1918_v51, %v728_v16  ;;  %v877_v25 = vadd.f32 %v1920_v37, %v729_v36  ;;  %v878_v61 = vadd.f32 %v1922_v29, %v730_v44  ;;  %954 = vst [vmem:[#allocation8 + $0x1e0] sm:$0xff] %v870_v63 }
 0x1d4   :  { %v879_v9 = vadd.f32 %v1924_v28, %v731_v58  ;;  %v880_v33 = vadd.f32 %v1926_v2, %v732_v48  ;;  %v881_v42 = vadd.f32 %v1928_v7, %v733_v30  ;;  %955 = vst [vmem:[#allocation8 + $0x1e8] sm:$0xff] %v871_v60  ;;  %956 = vst [vmem:[#allocation8 + $0x1f0] sm:$0xff] %v872_v46 }
 0x1d5   :  { %957 = vst [vmem:[#allocation8 + $0x1f8] sm:$0xff] %v873_v1  ;;  %958 = vst [vmem:[#allocation8 + $0x200] sm:$0xff] %v874_v12 }
 0x1d6   :  { %959 = vst [vmem:[#allocation8 + $0x208] sm:$0xff] %v875_v22  ;;  %960 = vst [vmem:[#allocation8 + $0x210] sm:$0xff] %v876_v13 }
 0x1d7   :  { %961 = vst [vmem:[#allocation8 + $0x218] sm:$0xff] %v877_v25  ;;  %962 = vst [vmem:[#allocation8 + $0x220] sm:$0xff] %v878_v61 }
 0x1d8   :  { %963 = vst [vmem:[#allocation8 + $0x228] sm:$0xff] %v879_v9  ;;  %964 = vst [vmem:[#allocation8 + $0x230] sm:$0xff] %v880_v33 }
 0x1d9   :  { %965 = vst [vmem:[#allocation8 + $0x238] sm:$0xff] %v881_v42 }
 0x1da   :  { %1087 = shalt.err (!%p1084_p5)
}
 0x1db   :  { %989 = dma.vmem_to_hbm [thread:$0]  %s984_s2, 10752, %s2205_s3, [#allocation4], %s1104_s20, %s1104_s20, %s1105_s21  }
 0x1dc   :  { %1100 = dma.done.wait [#allocation4], 10752  }
 0x1dd   :  { %1101 = vsyncadd [#allocation4], 4294956544 }
 0x1de   :  { %993 = vsyncpa [#allocation3], 1 }
 0x1df   :  { %994 = vsyncpa [#allocation6], 1 }
 0x1e0   :  { %995 = vsyncpa [#allocation4], 1 }

</bundles_post_ra>
